<compile_context>
chip_gen: v7x
topology: tpu7x:2x2x1
jax: 0.10.0
libtpu: 0.0.40
codegen_flags: <defaults>
</compile_context>

<pallas_src>
import functools

import jax
import jax.numpy as jnp
import numpy as np
from jax.experimental import pallas as pl
from jax.experimental.pallas import tpu as pltpu

BF16 = jnp.bfloat16
F32 = jnp.float32

# ---------------------------------------------------------------------------
# Static model dims (backbone: Linear(IN_DIM,HIDDEN)->ReLU->Linear(HIDDEN,OUT_F))
# ---------------------------------------------------------------------------
IN_DIM, HIDDEN, OUT_F = 1024, 128, 64        # 1024 = C*H*W = 4*16*16
HEAD = (512, 128, 64, 1)                     # per-head MLP widths
ZPAD = 128                                   # backbone output padded 64 -> 128 lanes
H1N, H2N, H3N, H4N = 2 * HEAD[0], 2 * HEAD[1], 2 * HEAD[2], 128  # fused widths

# Row offsets of the N=128-wide weights packed into one (1536, 128) bf16 buffer.
R_BW1 = (0, IN_DIM)                          # backbone lin1      (1024, 128)
R_BW2 = (R_BW1[1], R_BW1[1] + ZPAD)          # backbone lin2 pad  (128, 128)
R_HW3 = (R_BW2[1], R_BW2[1] + H2N)           # fused heads L3     (256, 128)
R_HW4 = (R_HW3[1], R_HW3[1] + H3N)           # fused heads L4 pad (128, 128)
WN_ROWS = R_HW4[1]                           # 1536

# Lane offsets of all biases packed into one (1, 1792) f32 buffer.
L_BB1 = (0, HIDDEN)
L_BB2 = (L_BB1[1], L_BB1[1] + ZPAD)
L_HB1 = (L_BB2[1], L_BB2[1] + H1N)
L_HB2 = (L_HB1[1], L_HB1[1] + H2N)
L_HB3 = (L_HB2[1], L_HB2[1] + H3N)
L_HB4 = (L_HB3[1], L_HB3[1] + H4N)
B_LANES = L_HB4[1]                           # 1792


def _vmem():
    # whole-array block resident in VMEM (all operands here are tiny, ~1.3 MB total)
    return pl.BlockSpec(memory_space=pltpu.MemorySpace.VMEM)


# ---------------------------------------------------------------------------
# Fused Pallas kernel: backbone -> (both heads fused, block-diagonal)
# ---------------------------------------------------------------------------
def fused_forward_kernel(x1_ref, x2_ref, wn_ref, wh1_ref, wh2_ref, b_ref,
                         out_ref, x_scratch, *, batch):
    """Single dependency chain of 6 wide MXU dots covering both images & heads.

    Shared backbone output never leaves VMEM/vregs; eval-mode BN is pre-folded
    into the head Linears; Dropout is identity.
    """
    # Stack both images on the batch axis in VMEM (no wrapper concat / extra
    # HBM roundtrip).  Masked sublane stores, tiny.
    x_scratch[0:batch, :] = x1_ref[...]
    x_scratch[batch:2 * batch, :] = x2_ref[...]
    x = x_scratch[...].astype(BF16)                        # (2B, IN_DIM)

    def mm(a, w):
        return jnp.dot(a, w, preferred_element_type=F32)

    # ---- backbone: Flatten (wrapper view) -> Linear -> ReLU -> Linear ------
    h = mm(x, wn_ref[R_BW1[0]:R_BW1[1], :]) + b_ref[:, L_BB1[0]:L_BB1[1]]
    h = jnp.maximum(h, 0.0).astype(BF16)
    z = (mm(h, wn_ref[R_BW2[0]:R_BW2[1], :]) + b_ref[:, L_BB2[0]:L_BB2[1]])
    z = z.astype(BF16)                                     # (2B, 128); cols 64: are 0

    # ---- both heads fused: wide layer 1, block-diagonal layers 2-4 ---------
    h = mm(z, wh1_ref[...]) + b_ref[:, L_HB1[0]:L_HB1[1]]          # (2B, 1024)
    h = jnp.maximum(h, 0.0).astype(BF16)
    h = mm(h, wh2_ref[...]) + b_ref[:, L_HB2[0]:L_HB2[1]]          # (2B, 256)
    h = jnp.maximum(h, 0.0).astype(BF16)
    h = mm(h, wn_ref[R_HW3[0]:R_HW3[1], :]) + b_ref[:, L_HB3[0]:L_HB3[1]]  # (2B, 128)
    h = jnp.maximum(h, 0.0).astype(BF16)
    # Lane-dense output slab: col 0 = other head, col 1 = prediction head.
    out_ref[...] = mm(h, wn_ref[R_HW4[0]:R_HW4[1], :]) + b_ref[:, L_HB4[0]:L_HB4[1]]


def run_fused(x1, x2, prepared):
    B = x1.shape[0]
    M = 2 * B
    args = (x1, x2, prepared["w_n128"], prepared["w_h1"], prepared["w_h2"],
            prepared["biases"])

    flops = 2 * M * (IN_DIM * HIDDEN + HIDDEN * ZPAD + ZPAD * H1N
                     + H1N * H2N + H2N * H3N + H3N * H4N)
    bytes_accessed = (sum(int(np.prod(a.shape)) * a.dtype.itemsize for a in args)
                      + M * H4N * 4)

    return pl.pallas_call(
        functools.partial(fused_forward_kernel, batch=B),
        out_shape=jax.ShapeDtypeStruct((M, H4N), F32),
        in_specs=[_vmem() for _ in args],
        out_specs=_vmem(),
        scratch_shapes=[pltpu.VMEM((M, IN_DIM), F32)],
        compiler_params=pltpu.CompilerParams(vmem_limit_bytes=8 * 1024 * 1024),
        cost_estimate=pl.CostEstimate(flops=flops, transcendentals=0,
                                      bytes_accessed=bytes_accessed),
    )(*args)


# ---------------------------------------------------------------------------
# Deterministic raw parameters (PyTorch-style Linear / BatchNorm1d state)
# ---------------------------------------------------------------------------
def make_linear(key, fan_in, fan_out):
    kw, kb = jax.random.split(key)
    bound = 1.0 / np.sqrt(fan_in)
    w = jax.random.uniform(kw, (fan_in, fan_out), F32, -bound, bound)
    b = jax.random.uniform(kb, (1, fan_out), F32, -bound, bound)
    return {"w": w, "b": b}


def make_bn(key, n, eps=1e-5):
    kg, kb, km, kv = jax.random.split(key, 4)
    return {"gamma": 1.0 + 0.1 * jax.random.normal(kg, (1, n), F32),
            "beta": 0.1 * jax.random.normal(kb, (1, n), F32),
            "mean": 0.1 * jax.random.normal(km, (1, n), F32),
            "var": jnp.abs(jax.random.normal(kv, (1, n), F32)) + 0.5,
            "eps": eps}


def make_backbone_raw(key):
    k1, k2 = jax.random.split(key)
    return {"lin1": make_linear(k1, IN_DIM, HIDDEN),
            "lin2": make_linear(k2, HIDDEN, OUT_F)}


def make_head_raw(key):
    dims = [OUT_F, *HEAD]
    keys = jax.random.split(key, 7)
    return {"lins": [make_linear(keys[i], dims[i], dims[i + 1]) for i in range(4)],
            "bns": [make_bn(keys[4 + i], dims[i + 1]) for i in range(3)]}


# ---------------------------------------------------------------------------
# Param preparation: fold eval-mode BN (f32), fuse heads, pack into 4 buffers
# ---------------------------------------------------------------------------
def fold_bn_into_linear(lin, bn):
    scale = bn["gamma"] / jnp.sqrt(bn["var"] + bn["eps"])      # (1, out)
    shift = bn["beta"] - bn["mean"] * scale
    return lin["w"] * scale, lin["b"] * scale + shift


def prepare_params(backbone_raw, other_raw, pred_raw, batch_size):
    # CustomBatchNorm1d: passthrough when the per-image batch is 1; static
    # Python branch (batch size is static here).
    apply_bn = batch_size > 1

    def folded(head):
        ws, bs = [], []
        for i in range(4):
            if i < 3 and apply_bn:
                w, b = fold_bn_into_linear(head["lins"][i], head["bns"][i])
            else:
                w, b = head["lins"][i]["w"], head["lins"][i]["b"]
            ws.append(w)
            bs.append(b)
        return ws, bs

    ow, ob = folded(other_raw)
    pw, pb = folded(pred_raw)

    # Backbone (lin2 zero-padded OUT_F -> ZPAD so z is lane-dense; pads are exact 0).
    bw1, bb1 = backbone_raw["lin1"]["w"], backbone_raw["lin1"]["b"]
    bw2 = jnp.zeros((HIDDEN, ZPAD), F32).at[:, :OUT_F].set(backbone_raw["lin2"]["w"])
    bb2 = jnp.zeros((1, ZPAD), F32).at[:, :OUT_F].set(backbone_raw["lin2"]["b"])

    # Heads layer 1: wide concat  z(128p) @ (128, 1024); padded rows are 0.
    hw1 = (jnp.zeros((ZPAD, H1N), F32)
           .at[:OUT_F, :HEAD[0]].set(ow[0])
           .at[:OUT_F, HEAD[0]:].set(pw[0]))
    hb1 = jnp.concatenate([ob[0], pb[0]], axis=1)

    # Heads layers 2-4: block-diagonal (padded zeros are free FLOPs).
    hw2 = (jnp.zeros((H1N, H2N), F32)
           .at[:HEAD[0], :HEAD[1]].set(ow[1])
           .at[HEAD[0]:, HEAD[1]:].set(pw[1]))
    hb2 = jnp.concatenate([ob[1], pb[1]], axis=1)

    hw3 = (jnp.zeros((H2N, H3N), F32)
           .at[:HEAD[1], :HEAD[2]].set(ow[2])
           .at[HEAD[1]:, HEAD[2]:].set(pw[2]))
    hb3 = jnp.concatenate([ob[2], pb[2]], axis=1)

    hw4 = (jnp.zeros((H3N, H4N), F32)
           .at[:HEAD[2], 0:1].set(ow[3])
           .at[HEAD[2]:2 * HEAD[2], 1:2].set(pw[3]))
    hb4 = jnp.zeros((1, H4N), F32).at[:, 0:1].set(ob[3]).at[:, 1:2].set(pb[3])

    # Pack: one bf16 buffer for all N=128 weights, two bf16 buffers for the wide
    # fused head weights, one f32 bias buffer.  BF16 cast happens last (fold in f32).
    w_n128 = jnp.concatenate([bw1, bw2, hw3, hw4], axis=0).astype(BF16)   # (1536,128)
    biases = jnp.concatenate([bb1, bb2, hb1, hb2, hb3, hb4], axis=1)      # (1,1792)
    assert w_n128.shape == (WN_ROWS, 128) and biases.shape == (1, B_LANES)
    return {"w_n128": w_n128,
            "w_h1": hw1.astype(BF16),       # (128, 1024)
            "w_h2": hw2.astype(BF16),       # (1024, 256)
            "biases": biases}


# ---------------------------------------------------------------------------
# OurModel forward (single fused pallas_call for both images & both heads)
# ---------------------------------------------------------------------------
def our_model_forward(img1, img2, prepared):
    B = img1.shape[0]
    # Flatten NCHW -> (B, F): free contiguous view; stacking happens in-kernel.
    out = run_fused(img1.reshape(B, -1), img2.reshape(B, -1), prepared)
    # (z_1o, z_1p, z_2o, z_2p).  A consumer that can index the (2B, 128) slab
    # directly avoids even these tiny slice ops.
    return out[:B, 0:1], out[:B, 1:2], out[B:, 0:1], out[B:, 1:2]


# ---------------------------------------------------------------------------
# Pure-JAX f32 reference (eval-mode semantics, un-folded raw params)
# ---------------------------------------------------------------------------
def ref_forward(img1, img2, backbone_raw, other_raw, pred_raw):
    B = img1.shape[0]

    def backbone(x):
        h = jnp.maximum(x @ backbone_raw["lin1"]["w"] + backbone_raw["lin1"]["b"], 0.0)
        return h @ backbone_raw["lin2"]["w"] + backbone_raw["lin2"]["b"]

    def head(z, raw):
        h = z
        for i in range(4):
            h = h @ raw["lins"][i]["w"] + raw["lins"][i]["b"]
            if i < 3:
                if z.shape[0] > 1:  # CustomBatchNorm1d passthrough rule
                    bn = raw["bns"][i]
                    h = ((h - bn["mean"]) / jnp.sqrt(bn["var"] + bn["eps"])
                         * bn["gamma"] + bn["beta"])
                h = jnp.maximum(h, 0.0)
        return h

    z1 = backbone(img1.reshape(B, -1))
    z2 = backbone(img2.reshape(B, -1))
    return (head(z1, other_raw), head(z1, pred_raw),
            head(z2, other_raw), head(z2, pred_raw))


if __name__ == "__main__":
    # small shapes: batch=2, channels=4, spatial=16x16 -> F = 1024
    B, C, H, W = 2, 4, 16, 16
    assert C * H * W == IN_DIM

    key = jax.random.PRNGKey(0)
    k_i1, k_i2, k_bb, k_oh, k_ph = jax.random.split(key, 5)

    img1 = jax.random.normal(k_i1, (B, C, H, W), F32)
    img2 = jax.random.normal(k_i2, (B, C, H, W), F32)

    backbone_raw = make_backbone_raw(k_bb)
    other_raw = make_head_raw(k_oh)
    pred_raw = make_head_raw(k_ph)

    prepared = prepare_params(backbone_raw, other_raw, pred_raw, batch_size=B)

    fwd = jax.jit(our_model_forward)
    outs = jax.block_until_ready(fwd(img1, img2, prepared))

    # sanity check against pure-JAX f32 reference (kernel uses bf16 weights,
    # f32 accumulation -> modest tolerance)
    refs = ref_forward(img1, img2, backbone_raw, other_raw, pred_raw)
    for o, r in zip(outs, refs):
        assert o.shape == (B, 1)
        np.testing.assert_allclose(np.asarray(o), np.asarray(r),
                                   rtol=5e-2, atol=5e-2)

    print("KERNEL_OK")
</pallas_src>

<mosaic_0001>
module attributes {stable_mosaic.version = 11 : i64} {
  func.func @fused_forward_kernel(%arg0: memref<2x1024xf32, #tpu.memory_space<vmem>>, %arg1: memref<2x1024xf32, #tpu.memory_space<vmem>>, %arg2: memref<1536x128xbf16, #tpu.memory_space<vmem>>, %arg3: memref<128x1024xbf16, #tpu.memory_space<vmem>>, %arg4: memref<1024x256xbf16, #tpu.memory_space<vmem>>, %arg5: memref<1x1792xf32, #tpu.memory_space<vmem>>, %arg6: memref<4x128xf32, #tpu.memory_space<vmem>>, %arg7: memref<4x1024xf32, #tpu.memory_space<vmem>>) attributes {dimension_semantics = [], scalar_prefetch = 0 : i64, scratch_operands = 1 : i64, tpu.core_type = #tpu.core_type<tc>} {
    %c0 = arith.constant 0 : index
    %c0_0 = arith.constant 0 : index
    %0 = vector.load %arg0[%c0, %c0_0] : memref<2x1024xf32, #tpu.memory_space<vmem>>, vector<2x1024xf32>
    %c0_1 = arith.constant 0 : index
    %c0_2 = arith.constant 0 : index
    %1 = vector.load %arg7[%c0_1, %c0_2] : memref<4x1024xf32, #tpu.memory_space<vmem>>, vector<2x1024xf32>
    tpu.vector_store %arg7[%c0_1, %c0_2], %0 {strides = array<i32>} : memref<4x1024xf32, #tpu.memory_space<vmem>>, vector<2x1024xf32>,
    %c0_3 = arith.constant 0 : index
    %c0_4 = arith.constant 0 : index
    %2 = vector.load %arg1[%c0_3, %c0_4] : memref<2x1024xf32, #tpu.memory_space<vmem>>, vector<2x1024xf32>
    %c2 = arith.constant 2 : index
    %c0_5 = arith.constant 0 : index
    %3 = vector.load %arg7[%c2, %c0_5] : memref<4x1024xf32, #tpu.memory_space<vmem>>, vector<2x1024xf32>
    tpu.vector_store %arg7[%c2, %c0_5], %2 {strides = array<i32>} : memref<4x1024xf32, #tpu.memory_space<vmem>>, vector<2x1024xf32>,
    %c0_6 = arith.constant 0 : index
    %c0_7 = arith.constant 0 : index
    %4 = vector.load %arg7[%c0_6, %c0_7] : memref<4x1024xf32, #tpu.memory_space<vmem>>, vector<4x1024xf32>
    %5 = arith.truncf %4 : vector<4x1024xf32> to vector<4x1024xbf16>
    %c0_8 = arith.constant 0 : index
    %c0_9 = arith.constant 0 : index
    %6 = vector.load %arg2[%c0_8, %c0_9] : memref<1536x128xbf16, #tpu.memory_space<vmem>>, vector<1024x128xbf16>
    %cst = arith.constant dense<0.000000e+00> : vector<4x128xf32>
    %7 = tpu.matmul %5, %6, %cst {dimension_numbers = #tpu.dot_dimension_numbers<[1], [0], [0], [1], [0, 0, 1, 1], [], []>} : vector<4x1024xbf16>, vector<1024x128xbf16>, vector<4x128xf32> -> vector<4x128xf32>
    %c0_10 = arith.constant 0 : index
    %c0_11 = arith.constant 0 : index
    %8 = vector.load %arg5[%c0_10, %c0_11] : memref<1x1792xf32, #tpu.memory_space<vmem>>, vector<1x128xf32>
    %9 = vector.broadcast %8 : vector<1x128xf32> to vector<4x128xf32>
    %10 = arith.addf %7, %9 : vector<4x128xf32>
    %cst_12 = arith.constant 0.000000e+00 : f32
    %11 = vector.broadcast %cst_12 : f32 to vector<4x128xf32>
    %12 = arith.maximumf %10, %11 : vector<4x128xf32>
    %13 = arith.truncf %12 : vector<4x128xf32> to vector<4x128xbf16>
    %c1024 = arith.constant 1024 : index
    %c0_13 = arith.constant 0 : index
    %14 = vector.load %arg2[%c1024, %c0_13] : memref<1536x128xbf16, #tpu.memory_space<vmem>>, vector<128x128xbf16>
    %cst_14 = arith.constant dense<0.000000e+00> : vector<4x128xf32>
    %15 = tpu.matmul %13, %14, %cst_14 {dimension_numbers = #tpu.dot_dimension_numbers<[1], [0], [0], [1], [0, 0, 1, 1], [], []>} : vector<4x128xbf16>, vector<128x128xbf16>, vector<4x128xf32> -> vector<4x128xf32>
    %c0_15 = arith.constant 0 : index
    %c128 = arith.constant 128 : index
    %16 = vector.load %arg5[%c0_15, %c128] : memref<1x1792xf32, #tpu.memory_space<vmem>>, vector<1x128xf32>
    %17 = vector.broadcast %16 : vector<1x128xf32> to vector<4x128xf32>
    %18 = arith.addf %15, %17 : vector<4x128xf32>
    %19 = arith.truncf %18 : vector<4x128xf32> to vector<4x128xbf16>
    %c0_16 = arith.constant 0 : index
    %c0_17 = arith.constant 0 : index
    %20 = vector.load %arg3[%c0_16, %c0_17] : memref<128x1024xbf16, #tpu.memory_space<vmem>>, vector<128x1024xbf16>
    %cst_18 = arith.constant dense<0.000000e+00> : vector<4x1024xf32>
    %21 = tpu.matmul %19, %20, %cst_18 {dimension_numbers = #tpu.dot_dimension_numbers<[1], [0], [0], [1], [0, 0, 1, 1], [], []>} : vector<4x128xbf16>, vector<128x1024xbf16>, vector<4x1024xf32> -> vector<4x1024xf32>
    %c0_19 = arith.constant 0 : index
    %c256 = arith.constant 256 : index
    %22 = vector.load %arg5[%c0_19, %c256] : memref<1x1792xf32, #tpu.memory_space<vmem>>, vector<1x1024xf32>
    %23 = vector.broadcast %22 : vector<1x1024xf32> to vector<4x1024xf32>
    %24 = arith.addf %21, %23 : vector<4x1024xf32>
    %cst_20 = arith.constant 0.000000e+00 : f32
    %25 = vector.broadcast %cst_20 : f32 to vector<4x1024xf32>
    %26 = arith.maximumf %24, %25 : vector<4x1024xf32>
    %27 = arith.truncf %26 : vector<4x1024xf32> to vector<4x1024xbf16>
    %c0_21 = arith.constant 0 : index
    %c0_22 = arith.constant 0 : index
    %28 = vector.load %arg4[%c0_21, %c0_22] : memref<1024x256xbf16, #tpu.memory_space<vmem>>, vector<1024x256xbf16>
    %cst_23 = arith.constant dense<0.000000e+00> : vector<4x256xf32>
    %29 = tpu.matmul %27, %28, %cst_23 {dimension_numbers = #tpu.dot_dimension_numbers<[1], [0], [0], [1], [0, 0, 1, 1], [], []>} : vector<4x1024xbf16>, vector<1024x256xbf16>, vector<4x256xf32> -> vector<4x256xf32>
    %c0_24 = arith.constant 0 : index
    %c1280 = arith.constant 1280 : index
    %30 = vector.load %arg5[%c0_24, %c1280] : memref<1x1792xf32, #tpu.memory_space<vmem>>, vector<1x256xf32>
    %31 = vector.broadcast %30 : vector<1x256xf32> to vector<4x256xf32>
    %32 = arith.addf %29, %31 : vector<4x256xf32>
    %cst_25 = arith.constant 0.000000e+00 : f32
    %33 = vector.broadcast %cst_25 : f32 to vector<4x256xf32>
    %34 = arith.maximumf %32, %33 : vector<4x256xf32>
    %35 = arith.truncf %34 : vector<4x256xf32> to vector<4x256xbf16>
    %c1152 = arith.constant 1152 : index
    %c0_26 = arith.constant 0 : index
    %36 = vector.load %arg2[%c1152, %c0_26] : memref<1536x128xbf16, #tpu.memory_space<vmem>>, vector<256x128xbf16>
    %cst_27 = arith.constant dense<0.000000e+00> : vector<4x128xf32>
    %37 = tpu.matmul %35, %36, %cst_27 {dimension_numbers = #tpu.dot_dimension_numbers<[1], [0], [0], [1], [0, 0, 1, 1], [], []>} : vector<4x256xbf16>, vector<256x128xbf16>, vector<4x128xf32> -> vector<4x128xf32>
    %c0_28 = arith.constant 0 : index
    %c1536 = arith.constant 1536 : index
    %38 = vector.load %arg5[%c0_28, %c1536] : memref<1x1792xf32, #tpu.memory_space<vmem>>, vector<1x128xf32>
    %39 = vector.broadcast %38 : vector<1x128xf32> to vector<4x128xf32>
    %40 = arith.addf %37, %39 : vector<4x128xf32>
    %cst_29 = arith.constant 0.000000e+00 : f32
    %41 = vector.broadcast %cst_29 : f32 to vector<4x128xf32>
    %42 = arith.maximumf %40, %41 : vector<4x128xf32>
    %43 = arith.truncf %42 : vector<4x128xf32> to vector<4x128xbf16>
    %c1408 = arith.constant 1408 : index
    %c0_30 = arith.constant 0 : index
    %44 = vector.load %arg2[%c1408, %c0_30] : memref<1536x128xbf16, #tpu.memory_space<vmem>>, vector<128x128xbf16>
    %cst_31 = arith.constant dense<0.000000e+00> : vector<4x128xf32>
    %45 = tpu.matmul %43, %44, %cst_31 {dimension_numbers = #tpu.dot_dimension_numbers<[1], [0], [0], [1], [0, 0, 1, 1], [], []>} : vector<4x128xbf16>, vector<128x128xbf16>, vector<4x128xf32> -> vector<4x128xf32>
    %c0_32 = arith.constant 0 : index
    %c1664 = arith.constant 1664 : index
    %46 = vector.load %arg5[%c0_32, %c1664] : memref<1x1792xf32, #tpu.memory_space<vmem>>, vector<1x128xf32>
    %47 = vector.broadcast %46 : vector<1x128xf32> to vector<4x128xf32>
    %48 = arith.addf %45, %47 : vector<4x128xf32>
    %c0_33 = arith.constant 0 : index
    %c0_34 = arith.constant 0 : index
    %49 = vector.load %arg6[%c0_33, %c0_34] : memref<4x128xf32, #tpu.memory_space<vmem>>, vector<4x128xf32>
    tpu.vector_store %arg6[%c0_33, %c0_34], %48 {strides = array<i32>} : memref<4x128xf32, #tpu.memory_space<vmem>>, vector<4x128xf32>,
    return
  }
}

</mosaic_0001>

<bundles_post_ra>
// kernel: our_model_forward.1
= control target key start
LH: loop header
LB: loop body
LE: loop exit
PB: predicated region body
PF: predicated region fallthrough
CT: control target
= control target key end

     0   :  { %11 = vsyncpa [#allocation4], 0  ;;  %s3855_s0 = inlined_call_operand.vmem [shape: f32[2,1024], index: 0, kind: input, shape index: {}]   ;;  %s3856_s1 = inlined_call_operand.vmem [shape: f32[2,1024], index: 1, kind: input, shape index: {}]   ;;  %s3857_s2 = inlined_call_operand.hbm [shape: bf16[1536,128], index: 2, kind: input, shape index: {}]   ;;  %s3858_s3 = inlined_call_operand.hbm [shape: bf16[128,1024], index: 3, kind: input, shape index: {}]   ;;  %s3859_s4 = inlined_call_operand.hbm [shape: bf16[1024,256], index: 4, kind: input, shape index: {}]   ;;  %s3860_s5 = inlined_call_operand.vmem [shape: f32[1,1792], index: 5, kind: input, shape index: {}]   ;;  %s3861_s6 = inlined_call_operand.vmem [shape: f32[4,128], index: 6, kind: output, shape index: {}]  }
   0x1   :  { %12 = vsyncpa [#allocation6], 0  ;;  %s3671_s21 = smov [#allocation5]   ;;  %s3601_s25 = scalar_lea.hbm %s3858_s3, 8192 }
   0x2   :  { %s34_s22 = sshll.u32 %s3671_s21, 4  ;;  %p3602_p0 = scmp.ne.s32.totalorder %s3858_s3, %s3601_s25  ;;  %s35_s22 = int_to_ptr.vmem [resolvable:$true] %s34_s22 }
   0x3   :  { %p3605_p1 = scmp.lt.u32.totalorder %s3601_s25, %s3858_s3 }
   0x5   :  { %p3607_p2 = pnand %p3605_p1, %p3602_p0 }
   0x7   :  { %3610 = shalt.err (!%p3607_p2)
}
   0x8   :  { %s3611_s30 = scalar_lea.vmem %s35_s22, 8192  ;;  %p3616_p4 = scmp.lt.s32.totalorder %s35_s22, %s35_s22 }
   0x9   :  { %p3612_p3 = scmp.ne.s32.totalorder %s35_s22, %s3611_s30  ;;  %p3617_p5 = scmp.lt.s32.totalorder %s3611_s30, %s3611_s30 }
   0xb   :  { %p3618_p6 = por %p3617_p5, %p3616_p4 }
   0xd   :  { %p3619_p7 = pnand %p3618_p6, %p3612_p3 }
   0xf   :  { %3622 = shalt.err (!%p3619_p7)
}
  0x10   :  { %s3672_s7 = smov 512   ;;  %s3673_s8 = smov 32  }
  0x11   :  { %40 = dma.hbm_to_vmem [thread:$0]  %s3858_s3, 8192, %s35_s22, [#allocation6], %s3672_s7, %s3672_s7, %s3673_s8  }
  0x12   :  { %s3674_s11 = smov [#allocation3]   ;;  %s3623_s15 = scalar_lea.hbm %s3857_s2, 12288 }
  0x13   :  { %s22_s12 = sshll.u32 %s3674_s11, 4  ;;  %p3624_p8 = scmp.ne.s32.totalorder %s3857_s2, %s3623_s15  ;;  %s23_s12 = int_to_ptr.vmem [resolvable:$true] %s22_s12 }
  0x14   :  { %p3627_p9 = scmp.lt.u32.totalorder %s3623_s15, %s3857_s2 }
  0x16   :  { %p3629_p10 = pnand %p3627_p9, %p3624_p8 }
  0x18   :  { %3632 = shalt.err (!%p3629_p10)
}
  0x19   :  { %s3633_s20 = scalar_lea.vmem %s23_s12, 12288  ;;  %p3638_p12 = scmp.lt.s32.totalorder %s23_s12, %s23_s12 }
  0x1a   :  { %p3634_p11 = scmp.ne.s32.totalorder %s23_s12, %s3633_s20  ;;  %p3639_p13 = scmp.lt.s32.totalorder %s3633_s20, %s3633_s20 }
  0x1c   :  { %p3640_p0 = por %p3639_p13, %p3638_p12 }
  0x1e   :  { %p3641_p1 = pnand %p3640_p0, %p3634_p11 }
  0x20   :  { %3644 = shalt.err (!%p3641_p1)
}
  0x21   :  { %s3675_s3 = smov 64   ;;  %s3676_s21 = smov 4  }
  0x22   :  { %28 = dma.hbm_to_vmem [thread:$0]  %s3857_s2, 12288, %s23_s12, [#allocation4], %s3675_s3, %s3675_s3, %s3676_s21  }
  0x23   :  { %s3677_s24 = smov [#allocation7]   ;;  %s3645_s28 = scalar_lea.hbm %s3859_s4, 16384 }
  0x24   :  { %s46_s25 = sshll.u32 %s3677_s24, 4  ;;  %p3646_p2 = scmp.ne.s32.totalorder %s3859_s4, %s3645_s28  ;;  %s47_s25 = int_to_ptr.vmem [resolvable:$true] %s46_s25 }
  0x25   :  { %p3649_p3 = scmp.lt.u32.totalorder %s3645_s28, %s3859_s4 }
  0x27   :  { %p3651_p4 = pnand %p3649_p3, %p3646_p2 }
  0x29   :  { %3654 = shalt.err (!%p3651_p4)
}
  0x2a   :  { %s3655_s9 = scalar_lea.vmem %s47_s25, 16384  ;;  %p3660_p6 = scmp.lt.s32.totalorder %s47_s25, %s47_s25 }
  0x2b   :  { %p3656_p5 = scmp.ne.s32.totalorder %s47_s25, %s3655_s9  ;;  %p3661_p7 = scmp.lt.s32.totalorder %s3655_s9, %s3655_s9 }
  0x2d   :  { %p3662_p8 = por %p3661_p7, %p3660_p6 }
  0x2f   :  { %p3663_p9 = pnand %p3662_p8, %p3656_p5 }
  0x31   :  { %3666 = shalt.err (!%p3663_p9)
}
  0x32   :  { %s3678_s2 = smov 128   ;;  %s3679_s10 = smov 8  }
  0x33   :  { %52 = dma.hbm_to_vmem [thread:$0]  %s3859_s4, 16384, %s47_s25, [#allocation6], %s3678_s2, %s3678_s2, %s3679_s10  }
  0x34   :  { %3667 = dma.done.wait [#allocation4], 12288  }
  0x35   :  { %3668 = vsyncadd [#allocation4], 4294955008 }
  0x36   :  { %3669 = dma.done.wait [#allocation6], 24576  }
  0x37   :  { %3670 = vsyncadd [#allocation6], 4294942720  ;;  %v3307_v0 = vld [vmem:[#allocation3 + $0x40] sm:$0xff]   ;;  %v3311_v4 = vld [vmem:[#allocation3 + $0x48] sm:$0xff]   ;;  %vm3681_vm0 = vmmov 0  }
  0x38   :  { %v3308_v1 = vld [vmem:[#allocation3 + $0xc0] sm:$0xff]   ;;  %3115 = vmatprep.subr.bf16.mxu0 %v3307_v0  ;;  %v3312_v5 = vld [vmem:[#allocation3 + $0xc8] sm:$0xff]   ;;  %v3315_v8 = vld [vmem:[#allocation3 + $0x50] sm:$0xff]  }
  0x39   :  { %v3309_v2 = vld [vmem:[#allocation3] sm:$0xff]   ;;  %3137 = vmatprep.subr.bf16.mxu1 %v3308_v1  ;;  %v3313_v6 = vld [vmem:[#allocation3 + $0x8] sm:$0xff]   ;;  %v3316_v9 = vld [vmem:[#allocation3 + $0xd0] sm:$0xff]  }
  0x3a   :  { %v3310_v3 = vld [vmem:[#allocation3 + $0x80] sm:$0xff]   ;;  %3116 = vmatpush3.bf16.msra.mxu0 %v3309_v2  ;;  %v3314_v7 = vld [vmem:[#allocation3 + $0x88] sm:$0xff]   ;;  %v3317_v10 = vld [vmem:[#allocation3 + $0x10] sm:$0xff]  }
  0x3b   :  { %3138 = vmatpush3.bf16.msra.mxu1 %v3310_v3  ;;  %3117 = vmatprep.subr.bf16.mxu0 %v3311_v4  ;;  %v3318_v11 = vld [vmem:[#allocation3 + $0x90] sm:$0xff]   ;;  %v3319_v12 = vld [vmem:[#allocation3 + $0x58] sm:$0xff]   ;;  %v3323_v16 = vld [vmem:[#allocation3 + $0x60] sm:$0xff]  }
  0x3c   :  { %3139 = vmatprep.subr.bf16.mxu1 %v3312_v5  ;;  %v3320_v13 = vld [vmem:[#allocation3 + $0xd8] sm:$0xff]   ;;  %v3324_v17 = vld [vmem:[#allocation3 + $0xe0] sm:$0xff]   ;;  %v3327_v20 = vld [vmem:[#allocation3 + $0x68] sm:$0xff]  }
  0x3d   :  { %v3321_v14 = vld [vmem:[#allocation3 + $0x18] sm:$0xff]   ;;  %v3325_v18 = vld [vmem:[#allocation3 + $0x20] sm:$0xff]   ;;  %v3328_v21 = vld [vmem:[#allocation3 + $0xe8] sm:$0xff]  }
  0x3e   :  { %3118 = vmatpush3.bf16.msra.mxu0 %v3313_v6  ;;  %v3322_v15 = vld [vmem:[#allocation3 + $0x98] sm:$0xff]   ;;  %v3326_v19 = vld [vmem:[#allocation3 + $0xa0] sm:$0xff]   ;;  %v3329_v22 = vld [vmem:[#allocation3 + $0x28] sm:$0xff]  }
  0x3f   :  { %3140 = vmatpush3.bf16.msra.mxu1 %v3314_v7  ;;  %3119 = vmatprep.subr.bf16.mxu0 %v3315_v8  ;;  %v3330_v23 = vld [vmem:[#allocation3 + $0xa8] sm:$0xff]   ;;  %v3331_v24 = vld [vmem:[#allocation3 + $0x70] sm:$0xff]   ;;  %v3335_v28 = vld [vmem:[#allocation3 + $0x78] sm:$0xff]  }
  0x40   :  { %3141 = vmatprep.subr.bf16.mxu1 %v3316_v9  ;;  %v3332_v25 = vld [vmem:[#allocation3 + $0xf0] sm:$0xff]   ;;  %v3336_v29 = vld [vmem:[#allocation3 + $0xf8] sm:$0xff]   ;;  %v65_v32 = vld [vmem:[%s3855_s0] sm:$0xff] }
  0x41   :  { %v3333_v26 = vld [vmem:[#allocation3 + $0x30] sm:$0xff]   ;;  %v3337_v30 = vld [vmem:[#allocation3 + $0x38] sm:$0xff]   ;;  %v107_v33 = vld [vmem:[%s3856_s1] sm:$0xff]  ;;  %v69_v35 = vcombine.high %v65_v32, %v65_v32 }
  0x42   :  { %3120 = vmatpush3.bf16.msra.mxu0 %v3317_v10  ;;  %v3334_v27 = vld [vmem:[#allocation3 + $0xb0] sm:$0xff]   ;;  %v3338_v31 = vld [vmem:[#allocation3 + $0xb8] sm:$0xff]   ;;  %2815 = vst.sshfl [vmem:[#allocation2] sm:$0xf pattern:$0x76325410] %v65_v32  ;;  %v111_v34 = vcombine.low %v107_v33, %v107_v33 }
  0x43   :  { %3142 = vmatpush3.bf16.msra.mxu1 %v3318_v11  ;;  %3121 = vmatprep.subr.bf16.mxu0 %v3319_v12  ;;  %2820 = vst.sshfl [vmem:[#allocation2 + $0x8] sm:$0xf0 pattern:$0x76325410] %v107_v33  ;;  %v3342_v36 = vld [vmem:[#allocation3 + $0x140] sm:$0xff]   ;;  %v3346_v48 = vld [vmem:[#allocation3 + $0x148] sm:$0xff]  }
  0x44   :  { %3143 = vmatprep.subr.bf16.mxu1 %v3320_v13  ;;  %v3343_v37 = vld [vmem:[#allocation3 + $0x1c0] sm:$0xff]   ;;  %2819 = vst.sshfl [vmem:[#allocation2] sm:$0xf0 pattern:$0x76325410] %v111_v34  ;;  %v3347_v49 = vld [vmem:[#allocation3 + $0x1c8] sm:$0xff]  }
  0x45   :  { %2816 = vst.sshfl [vmem:[#allocation2 + $0x8] sm:$0xf pattern:$0x76325410] %v69_v35  ;;  %v3344_v42 = vld [vmem:[#allocation3 + $0x100] sm:$0xff]   ;;  %v3348_v50 = vld [vmem:[#allocation3 + $0x108] sm:$0xff]  }
  0x46   :  { %3122 = vmatpush3.bf16.msra.mxu0 %v3321_v14  ;;  %v3345_v45 = vld [vmem:[#allocation3 + $0x180] sm:$0xff]   ;;  %v3349_v51 = vld [vmem:[#allocation3 + $0x188] sm:$0xff]   ;;  %v3350_v52 = vld [vmem:[#allocation3 + $0x150] sm:$0xff]  }
  0x47   :  { %3144 = vmatpush3.bf16.msra.mxu1 %v3322_v15  ;;  %3123 = vmatprep.subr.bf16.mxu0 %v3323_v16  ;;  %v3351_v53 = vld [vmem:[#allocation3 + $0x1d0] sm:$0xff]   ;;  %v3354_v56 = vld [vmem:[#allocation3 + $0x158] sm:$0xff]   ;;  %v3358_v60 = vld [vmem:[#allocation3 + $0x160] sm:$0xff]  }
  0x48   :  { %3145 = vmatprep.subr.bf16.mxu1 %v3324_v17  ;;  %v3352_v54 = vld [vmem:[#allocation3 + $0x110] sm:$0xff]   ;;  %v3355_v57 = vld [vmem:[#allocation3 + $0x1d8] sm:$0xff]   ;;  %v3359_v61 = vld [vmem:[#allocation3 + $0x1e0] sm:$0xff]  }
  0x49   :  { %v3353_v55 = vld [vmem:[#allocation3 + $0x190] sm:$0xff]   ;;  %v3356_v58 = vld [vmem:[#allocation3 + $0x118] sm:$0xff]   ;;  %v3360_v62 = vld [vmem:[#allocation3 + $0x120] sm:$0xff]  }
  0x4a   :  { %3124 = vmatpush3.bf16.msra.mxu0 %v3325_v18  ;;  %v3357_v59 = vld [vmem:[#allocation3 + $0x198] sm:$0xff]   ;;  %v3361_v63 = vld [vmem:[#allocation3 + $0x1a0] sm:$0xff]   ;;  %v3362_v0 = vld [vmem:[#allocation3 + $0x168] sm:$0xff]  }
  0x4b   :  { %3146 = vmatpush3.bf16.msra.mxu1 %v3326_v19  ;;  %3125 = vmatprep.subr.bf16.mxu0 %v3327_v20  ;;  %v149_v38 = vld [vmem:[#allocation2] sm:$0xff]  ;;  %v3363_v1 = vld [vmem:[#allocation3 + $0x1e8] sm:$0xff]   ;;  %v3366_v4 = vld [vmem:[#allocation3 + $0x170] sm:$0xff]  }
  0x4c   :  { %3147 = vmatprep.subr.bf16.mxu1 %v3328_v21  ;;  %v150_v39 = vld [vmem:[#allocation2 + $0x8] sm:$0xff]  ;;  %v157_v40 = vcombine.high %v149_v38, %v149_v38  ;;  %v165_v43 = vpack.c.bf16 %v149_v38, %v149_v38  ;;  %v3367_v5 = vld [vmem:[#allocation3 + $0x1f0] sm:$0xff]   ;;  %v3370_v12 = vld [vmem:[#allocation3 + $0x178] sm:$0xff]  }
  0x4d   :  { %v158_v41 = vcombine.high %v150_v39, %v150_v39  ;;  %v167_v44 = vpack.c.bf16 %v150_v39, %v150_v39  ;;  %v3364_v2 = vld [vmem:[#allocation3 + $0x128] sm:$0xff]   ;;  %v3368_v10 = vld [vmem:[#allocation3 + $0x130] sm:$0xff]   ;;  %v3371_v13 = vld [vmem:[#allocation3 + $0x1f8] sm:$0xff]  }
  0x4e   :  { %3126 = vmatpush3.bf16.msra.mxu0 %v3329_v22  ;;  %v166_v46 = vpack.c.bf16 %v157_v40, %v157_v40  ;;  %v3365_v3 = vld [vmem:[#allocation3 + $0x1a8] sm:$0xff]   ;;  %v3369_v11 = vld [vmem:[#allocation3 + $0x1b0] sm:$0xff]   ;;  %v3372_v14 = vld [vmem:[#allocation3 + $0x138] sm:$0xff]  }
  0x4f   :  { %3148 = vmatpush3.bf16.msra.mxu1 %v3330_v23  ;;  %3127 = vmatprep.subr.bf16.mxu0 %v3331_v24  ;;  %v168_v47 = vpack.c.bf16 %v158_v41, %v158_v41  ;;  %v66_v6 = vld [vmem:[%s3855_s0 + $0x8] sm:$0xff]  ;;  %v3373_v15 = vld [vmem:[#allocation3 + $0x1b8] sm:$0xff]   ;;  %v3377_v24 = vld [vmem:[#allocation3 + $0x200] sm:$0xff]  }
  0x50   :  { %3149 = vmatprep.subr.bf16.mxu1 %v3332_v25  ;;  %724 = vmatprep.mubr.bf16.mxu0 %v166_v46  ;;  %v108_v7 = vld [vmem:[%s3856_s1 + $0x8] sm:$0xff]  ;;  %2817 = vst.sshfl [vmem:[#allocation2 + $0x10] sm:$0xf pattern:$0x76325410] %v66_v6  ;;  %v84_v9 = vcombine.high %v66_v6, %v66_v6  ;;  %v3680_v25 = vmov 0.0  }
  0x51   :  { %764 = vmatprep.mubr.bf16.mxu1 %v168_v47  ;;  %v126_v8 = vcombine.low %v108_v7, %v108_v7  ;;  %2822 = vst.sshfl [vmem:[#allocation2 + $0x18] sm:$0xf0 pattern:$0x76325410] %v108_v7  ;;  %v3384_v32 = vld [vmem:[#allocation3 + $0x238] sm:$0xff]   ;;  %v966_v33 = vld [vmem:[#allocation5] sm:$0xff] }
  0x52   :  { %3128 = vmatpush3.bf16.msra.mxu0 %v3333_v26  ;;  %2818 = vst.sshfl [vmem:[#allocation2 + $0x18] sm:$0xf pattern:$0x76325410] %v84_v9  ;;  %v3378_v26 = vld [vmem:[#allocation3 + $0x208] sm:$0xff]   ;;  %v970_v34 = vld [vmem:[#allocation5 + $0x20] sm:$0xff] }
  0x53   :  { %3150 = vmatpush3.bf16.msra.mxu1 %v3334_v27  ;;  %3129 = vmatprep.subr.bf16.mxu0 %v3335_v28  ;;  %2821 = vst.sshfl [vmem:[#allocation2 + $0x10] sm:$0xf0 pattern:$0x76325410] %v126_v8  ;;  %v3379_v27 = vld [vmem:[#allocation3 + $0x210] sm:$0xff]   ;;  %v3380_v28 = vld [vmem:[#allocation3 + $0x218] sm:$0xff]  }
  0x54   :  { %3151 = vmatprep.subr.bf16.mxu1 %v3336_v29  ;;  %v3381_v29 = vld [vmem:[#allocation3 + $0x220] sm:$0xff]   ;;  %v3776_v35 = vld [vmem:[#allocation5 + $0x8] sm:$0xff] }
  0x55   :  { %v3778_v38 = vld [vmem:[#allocation5 + $0x28] sm:$0xff]  ;;  %v974_v39 = vld [vmem:[#allocation5 + $0x40] sm:$0xff] }
  0x56   :  { %3130 = vmatpush3.bf16.msra.mxu0 %v3337_v30  ;;  %v3382_v30 = vld [vmem:[#allocation3 + $0x228] sm:$0xff]   ;;  %v978_v40 = vld [vmem:[#allocation5 + $0x60] sm:$0xff]  ;;  %v2899_v41 = vcombine.low %v3776_v35, %v3778_v38 }
  0x57   :  { %3152 = vmatpush3.bf16.msra.mxu1 %v3338_v31  ;;  %3159 = vmatprep.subr.bf16.mxu0 %v3342_v36  ;;  %v3383_v31 = vld [vmem:[#allocation3 + $0x230] sm:$0xff]   ;;  %v2897_v36 = vcombine.low %v966_v33, %v970_v34  ;;  %v986_v46 = vld [vmem:[#allocation5 + $0xa0] sm:$0xff] }
  0x58   :  { %3181 = vmatprep.subr.bf16.mxu1 %v3343_v37  ;;  %v2898_v37 = vcombine.high %v966_v33, %v970_v34  ;;  %v987_v33 = vld [vmem:[#allocation5 + $0xa8] sm:$0xff] }
  0x59   :  { %725 = vmatmul.mubr.bf16.vlgmr.msra.gmra.mrb[0].mxu0 %v165_v43  ;;  %v152_v17 = vld [vmem:[#allocation2 + $0x18] sm:$0xff]  ;;  %v2906_v43 = vcombine.high %v974_v39, %v978_v40 }
  0x5a   :  { %765 = vmatmul.mubr.bf16.vlgmr.msra.gmra.mrb[0].mxu1 %v167_v44  ;;  %3160 = vmatpush3.bf16.msra.mxu0 %v3344_v42  ;;  %v151_v16 = vld [vmem:[#allocation2 + $0x10] sm:$0xff]  ;;  %v160_v19 = vcombine.high %v152_v17, %v152_v17  ;;  %v171_v21 = vpack.c.bf16 %v152_v17, %v152_v17  ;;  %v2900_v42 = vcombine.high %v3776_v35, %v3778_v38 }
  0x5b   :  { %3182 = vmatpush3.bf16.msra.mxu1 %v3345_v45  ;;  %3161 = vmatprep.subr.bf16.mxu0 %v3346_v48  ;;  %v159_v18 = vcombine.high %v151_v16, %v151_v16  ;;  %v169_v20 = vpack.c.bf16 %v151_v16, %v151_v16  ;;  %v2905_v44 = vcombine.low %v974_v39, %v978_v40  ;;  %v982_v45 = vld [vmem:[#allocation5 + $0x80] sm:$0xff]  ;;  %v995_v39 = vld [vmem:[#allocation5 + $0xe8] sm:$0xff] }
  0x5c   :  { %3183 = vmatprep.subr.bf16.mxu1 %v3347_v49  ;;  %v172_v23 = vpack.c.bf16 %v160_v19, %v160_v19  ;;  %v2914_v47 = vcombine.high %v982_v45, %v986_v46  ;;  %v2913_v48 = vcombine.low %v982_v45, %v986_v46  ;;  %v990_v49 = vld [vmem:[#allocation5 + $0xc0] sm:$0xff] }
  0x5d   :  { %v170_v22 = vpack.c.bf16 %v159_v18, %v159_v18 }
  0x5e   :  { %3162 = vmatpush3.bf16.msra.mxu0 %v3348_v50  ;;  %844 = vmatprep.mubr.bf16.mxu1 %v172_v23  ;;  %v994_v50 = vld [vmem:[#allocation5 + $0xe0] sm:$0xff] }
  0x5f   :  { %3184 = vmatpush3.bf16.msra.mxu1 %v3349_v51  ;;  %3163 = vmatprep.subr.bf16.mxu0 %v3350_v52  ;;  %v2922_v51 = vcombine.high %v990_v49, %v994_v50  ;;  %v2921_v52 = vcombine.low %v990_v49, %v994_v50  ;;  %v1019_v49 = vld [vmem:[#allocation5 + $0x1a8] sm:$0xff] }
  0x60   :  { %3185 = vmatprep.subr.bf16.mxu1 %v3351_v53  ;;  %804 = vmatprep.mubr.bf16.mxu0 %v170_v22  ;;  %v998_v53 = vld [vmem:[#allocation5 + $0x100] sm:$0xff] }
  0x62   :  { %3164 = vmatpush3.bf16.msra.mxu0 %v3352_v54  ;;  %v1002_v54 = vld [vmem:[#allocation5 + $0x120] sm:$0xff] }
  0x63   :  { %3186 = vmatpush3.bf16.msra.mxu1 %v3353_v55  ;;  %3165 = vmatprep.subr.bf16.mxu0 %v3354_v56  ;;  %v2930_v55 = vcombine.high %v998_v53, %v1002_v54  ;;  %v2929_v56 = vcombine.low %v998_v53, %v1002_v54  ;;  %v1022_v53 = vld [vmem:[#allocation5 + $0x1c0] sm:$0xff] }
  0x64   :  { %3187 = vmatprep.subr.bf16.mxu1 %v3355_v57  ;;  %v1006_v57 = vld [vmem:[#allocation5 + $0x140] sm:$0xff] }
  0x65   :  { %v1026_v54 = vld [vmem:[#allocation5 + $0x1e0] sm:$0xff] }
  0x66   :  { %3166 = vmatpush3.bf16.msra.mxu0 %v3356_v58  ;;  %v1010_v58 = vld [vmem:[#allocation5 + $0x160] sm:$0xff] }
  0x67   :  { %3188 = vmatpush3.bf16.msra.mxu1 %v3357_v59  ;;  %3167 = vmatprep.subr.bf16.mxu0 %v3358_v60  ;;  %v2938_v59 = vcombine.high %v1006_v57, %v1010_v58  ;;  %v2937_v60 = vcombine.low %v1006_v57, %v1010_v58  ;;  %v1027_v57 = vld [vmem:[#allocation5 + $0x1e8] sm:$0xff]  ;;  %v2953_v58 = vcombine.low %v1022_v53, %v1026_v54 }
  0x68   :  { %3189 = vmatprep.subr.bf16.mxu1 %v3359_v61  ;;  %v1014_v61 = vld [vmem:[#allocation5 + $0x180] sm:$0xff] }
  0x6a   :  { %3168 = vmatpush3.bf16.msra.mxu0 %v3360_v62  ;;  %v1018_v62 = vld [vmem:[#allocation5 + $0x1a0] sm:$0xff] }
  0x6b   :  { %3190 = vmatpush3.bf16.msra.mxu1 %v3361_v63  ;;  %3169 = vmatprep.subr.bf16.mxu0 %v3362_v0  ;;  %v2946_v63 = vcombine.high %v1014_v61, %v1018_v62  ;;  %v2945_v0 = vcombine.low %v1014_v61, %v1018_v62  ;;  %v968_v61 = vld [vmem:[#allocation5 + $0x10] sm:$0xff] }
  0x6c   :  { %3191 = vmatprep.subr.bf16.mxu1 %v3363_v1  ;;  %v972_v62 = vld [vmem:[#allocation5 + $0x30] sm:$0xff] }
  0x6e   :  { %3170 = vmatpush3.bf16.msra.mxu0 %v3364_v2 }
  0x6f   :  { %3192 = vmatpush3.bf16.msra.mxu1 %v3365_v3  ;;  %3171 = vmatprep.subr.bf16.mxu0 %v3366_v4  ;;  %v2823_v3 = vld [vmem:[%s3860_s5] ss:$0 sm:$0xff] }
  0x70   :  { %3193 = vmatprep.subr.bf16.mxu1 %v3367_v5 }
  0x72   :  { %3172 = vmatpush3.bf16.msra.mxu0 %v3368_v10 }
  0x73   :  { %3194 = vmatpush3.bf16.msra.mxu1 %v3369_v11  ;;  %3173 = vmatprep.subr.bf16.mxu0 %v3370_v12 }
  0x74   :  { %3195 = vmatprep.subr.bf16.mxu1 %v3371_v13 }
  0x76   :  { %3174 = vmatpush3.bf16.msra.mxu0 %v3372_v14 }
  0x77   :  { %3196 = vmatpush3.bf16.msra.mxu1 %v3373_v15  ;;  %3243 = vmatprep.subr.bf16.mxu0 %v3680_v25 }
  0x78   :  { %1392 = vmatprep.subr.bf16.mxu1 %v2898_v37  ;;  %v991_v37 = vld [vmem:[#allocation5 + $0xc8] sm:$0xff] }
  0x79   :  { %805 = vmatmul.mubr.bf16.vlgmr.msra.gmra.mrb[4].mxu0 %v169_v20  ;;  %v2923_v45 = vcombine.low %v991_v37, %v995_v39 }
  0x7a   :  { %845 = vmatmul.mubr.bf16.vlgmr.msra.gmra.mrb[4].mxu1 %v171_v21  ;;  %3244 = vmatpush3.bf16.msra.mxu0 %v3377_v24 }
  0x7b   :  { %3245 = vmatprep.subr.bf16.mxu0 %v3680_v25  ;;  %3259 = vmatprep.mubr.msk.bf16.mxu0 %vm3681_vm0, %v3680_v25 }
  0x7c   :  { %1393 = vmatpush1.bf16.msra.mxu1 %v2897_v36 }
  0x7d   :  { %1394 = vmatprep.subr.bf16.mxu1 %v2906_v43  ;;  %v999_v43 = vld [vmem:[#allocation5 + $0x108] sm:$0xff] }
  0x7e   :  { %3246 = vmatpush3.bf16.msra.mxu0 %v3378_v26 }
  0x7f   :  { %3247 = vmatprep.subr.bf16.mxu0 %v3680_v25 }
  0x80   :  { %1395 = vmatpush1.bf16.msra.mxu1 %v2905_v44  ;;  %v1003_v44 = vld [vmem:[#allocation5 + $0x128] sm:$0xff] }
  0x81   :  { %1396 = vmatprep.subr.bf16.mxu1 %v2914_v47  ;;  %v2932_v46 = vcombine.high %v999_v43, %v1003_v44  ;;  %v1007_v47 = vld [vmem:[#allocation5 + $0x148] sm:$0xff]  ;;  %v2931_v35 = vcombine.low %v999_v43, %v1003_v44 }
  0x82   :  { %3248 = vmatpush3.bf16.msra.mxu0 %v3379_v27  ;;  %v975_v27 = vld [vmem:[#allocation5 + $0x48] sm:$0xff] }
  0x83   :  { %3249 = vmatprep.subr.bf16.mxu0 %v3680_v25 }
  0x84   :  { %1397 = vmatpush1.bf16.msra.mxu1 %v2913_v48  ;;  %v1011_v48 = vld [vmem:[#allocation5 + $0x168] sm:$0xff] }
  0x85   :  { %1398 = vmatprep.subr.bf16.mxu1 %v2922_v51  ;;  %v2940_v38 = vcombine.high %v1007_v47, %v1011_v48  ;;  %v2939_v50 = vcombine.low %v1007_v47, %v1011_v48  ;;  %v1008_v47 = vld [vmem:[#allocation5 + $0x150] sm:$0xff] }
  0x86   :  { %3250 = vmatpush3.bf16.msra.mxu0 %v3380_v28  ;;  %v979_v28 = vld [vmem:[#allocation5 + $0x68] sm:$0xff]  ;;  %v1012_v48 = vld [vmem:[#allocation5 + $0x170] sm:$0xff] }
  0x87   :  { %3251 = vmatprep.subr.bf16.mxu0 %v3680_v25  ;;  %v2907_v34 = vcombine.low %v975_v27, %v979_v28 }
  0x88   :  { %1399 = vmatpush1.bf16.msra.mxu1 %v2921_v52 }
  0x89   :  { %1400 = vmatprep.subr.bf16.mxu1 %v2930_v55  ;;  %v1023_v55 = vld [vmem:[#allocation5 + $0x1c8] sm:$0xff] }
  0x8a   :  { %3252 = vmatpush3.bf16.msra.mxu0 %v3381_v29 }
  0x8b   :  { %3253 = vmatprep.subr.bf16.mxu0 %v3680_v25 }
  0x8c   :  { %1401 = vmatpush1.bf16.msra.mxu1 %v2929_v56  ;;  %v2954_v56 = vcombine.high %v1022_v53, %v1026_v54  ;;  %v1020_v53 = vld [vmem:[#allocation5 + $0x1b0] sm:$0xff]  ;;  %v1017_v54 = vld [vmem:[#allocation5 + $0x198] sm:$0xff] }
  0x8d   :  { %1402 = vmatprep.subr.bf16.mxu1 %v2938_v59  ;;  %v2955_v59 = vcombine.low %v1023_v55, %v1027_v57 }
  0x8e   :  { %3254 = vmatpush3.bf16.msra.mxu0 %v3382_v30 }
  0x8f   :  { %3255 = vmatprep.subr.bf16.mxu0 %v3680_v25 }
  0x90   :  { %1403 = vmatpush1.bf16.msra.mxu1 %v2937_v60  ;;  %v2956_v60 = vcombine.high %v1023_v55, %v1027_v57  ;;  %v1021_v55 = vld [vmem:[#allocation5 + $0x1b8] sm:$0xff] }
  0x91   :  { %1404 = vmatprep.subr.bf16.mxu1 %v2946_v63  ;;  %v969_v63 = vld [vmem:[#allocation5 + $0x18] sm:$0xff] }
  0x92   :  { %3256 = vmatpush3.bf16.msra.mxu0 %v3383_v31  ;;  %v2908_v31 = vcombine.high %v975_v27, %v979_v28  ;;  %v992_v28 = vld [vmem:[#allocation5 + $0xd0] sm:$0xff] }
  0x93   :  { %3257 = vmatprep.subr.bf16.mxu0 %v3680_v25 }
  0x94   :  { %1405 = vmatpush1.bf16.msra.mxu1 %v2945_v0  ;;  %v2902_v0 = vcombine.high %v968_v61, %v972_v62 }
  0x95   :  { %1406 = vmatprep.subr.bf16.mxu1 %v2954_v56  ;;  %v2941_v56 = vcombine.low %v1008_v47, %v1012_v48 }
  0x96   :  { %3258 = vmatpush3.bf16.msra.mxu0 %v3384_v32  ;;  %v983_v32 = vld [vmem:[#allocation5 + $0x88] sm:$0xff] }
  0x97   :  { %1433 = vmatprep.subr.bf16.mxu0 %v2900_v42  ;;  %v2916_v36 = vcombine.high %v983_v32, %v987_v33  ;;  %v2915_v40 = vcombine.low %v983_v32, %v987_v33  ;;  %v2924_v42 = vcombine.high %v991_v37, %v995_v39  ;;  %v1000_v37 = vld [vmem:[#allocation5 + $0x110] sm:$0xff] }
  0x98   :  { %1407 = vmatpush1.bf16.msra.mxu1 %v2953_v58  ;;  %v1004_v39 = vld [vmem:[#allocation5 + $0x130] sm:$0xff] }
  0x99   :  { %1474 = vmatprep.subr.bf16.mxu1 %v2902_v0 }
 0x12c   :  { %v3131_v1 = vpop.f32.mrb[0].mxu0 }
 0x12d   :  { %v3153_v2 = vpop.f32.mrb[0].mxu1  ;;  %v3132_v4 = vpop.f32.mrb[1].mxu0 }
 0x12e   :  { %v3154_v5 = vpop.f32.mrb[1].mxu1  ;;  %v3133_v6 = vadd.f32 %v3132_v4, %v3131_v1  ;;  %v3134_v8 = vpop.f32.mrb[2].mxu0  ;;  %v973_v1 = vld [vmem:[#allocation5 + $0x38] sm:$0xff] }
 0x12f   :  { %v3155_v7 = vadd.f32 %v3154_v5, %v3153_v2  ;;  %v3156_v9 = vpop.f32.mrb[2].mxu1  ;;  %v3135_v10 = vpop.f32.mrb[3].mxu0  ;;  %v2901_v2 = vcombine.low %v968_v61, %v972_v62  ;;  %v2904_v4 = vcombine.high %v969_v63, %v973_v1  ;;  %v3682_v5 = vmov 0   ;;  %v1028_v61 = vld [vmem:[#allocation5 + $0x1f0] sm:$0xff]  ;;  %v1025_v62 = vld [vmem:[#allocation5 + $0x1d8] sm:$0xff] }
 0x130   :  { %v3157_v11 = vpop.f32.mrb[3].mxu1  ;;  %v727_v12 = vadd.f32 %v3133_v6, %v2823_v3  ;;  %v2903_v3 = vcombine.low %v969_v63, %v973_v1  ;;  %1424 = vmatprep.mubr.bf16.mxu1 %v3682_v5  ;;  %v2888_v6 = vld [vmem:[%s3860_s5 + $0x1] ss:$0 sm:$0xff]  ;;  %v980_v9 = vld [vmem:[#allocation5 + $0x70] sm:$0xff]  ;;  %v977_v10 = vld [vmem:[#allocation5 + $0x58] sm:$0xff]  ;;  %v2951_v1 = vcombine.low %v1017_v54, %v1021_v55 }
 0x131   :  { %v981_v11 = vld [vmem:[#allocation5 + $0x78] sm:$0xff] }
 0x132   :  { %v767_v13 = vadd.f32 %v3155_v7, %v727_v12  ;;  %v976_v7 = vld [vmem:[#allocation5 + $0x50] sm:$0xff]  ;;  %v1029_v63 = vld [vmem:[#allocation5 + $0x1f8] sm:$0xff] }
 0x14c   :  { %v3175_v14 = vpop.f32.mrb[4].mxu0 }
 0x14d   :  { %v3197_v15 = vpop.f32.mrb[4].mxu1  ;;  %v3176_v16 = vpop.f32.mrb[5].mxu0 }
 0x14e   :  { %v3198_v17 = vpop.f32.mrb[5].mxu1  ;;  %v3177_v18 = vadd.f32 %v3176_v16, %v3175_v14  ;;  %v3178_v20 = vpop.f32.mrb[6].mxu0 }
 0x14f   :  { %v3199_v19 = vadd.f32 %v3198_v17, %v3197_v15  ;;  %v3200_v21 = vpop.f32.mrb[6].mxu1  ;;  %v3179_v22 = vpop.f32.mrb[7].mxu0  ;;  %v2910_v17 = vcombine.high %v976_v7, %v980_v9  ;;  %v988_v20 = vld [vmem:[#allocation5 + $0xb0] sm:$0xff] }
 0x150   :  { %v3201_v23 = vpop.f32.mrb[7].mxu1  ;;  %v807_v24 = vadd.f32 %v3177_v18, %v767_v13  ;;  %v2912_v18 = vcombine.high %v977_v10, %v981_v11  ;;  %v985_v21 = vld [vmem:[#allocation5 + $0x98] sm:$0xff] }
 0x151   :  { %v989_v22 = vld [vmem:[#allocation5 + $0xb8] sm:$0xff]  ;;  %v2909_v23 = vcombine.low %v976_v7, %v980_v9  ;;  %v3390_v7 = vld [vmem:[#allocation7 + $0x4] ss:$8 sps:$4 sm:$0xff]   ;;  %v3388_v9 = vld [vmem:[#allocation7] ss:$8 sps:$4 sm:$0xff]  }
 0x152   :  { %v847_v26 = vadd.f32 %v3199_v19, %v807_v24  ;;  %v984_v19 = vld [vmem:[#allocation5 + $0x90] sm:$0xff]  ;;  %v2911_v24 = vcombine.low %v977_v10, %v981_v11  ;;  %v2920_v27 = vcombine.high %v985_v21, %v989_v22  ;;  %v2919_v33 = vcombine.low %v985_v21, %v989_v22  ;;  %v3411_v22 = vld [vmem:[#allocation7 + $0x144] ss:$8 sps:$4 sm:$0xff]  }
 0x153   :  { %v2917_v32 = vcombine.low %v984_v19, %v988_v20  ;;  %v3393_v10 = vld [vmem:[#allocation7 + $0x114] ss:$8 sps:$4 sm:$0xff]   ;;  %v3403_v21 = vld [vmem:[#allocation7 + $0x130] ss:$8 sps:$4 sm:$0xff]  }
 0x154   :  { %v852_v29 = vmax.f32 %v847_v26, 0.0  ;;  %v2918_v26 = vcombine.high %v984_v19, %v988_v20  ;;  %v3396_v11 = vld [vmem:[#allocation7 + $0x14] ss:$8 sps:$4 sm:$0xff]  }
 0x155   :  { %v3405_v19 = vld [vmem:[#allocation7 + $0x134] ss:$8 sps:$4 sm:$0xff]  }
 0x156   :  { %v853_v30 = vpack.c.bf16 %v852_v29, %v852_v29  ;;  %v996_v29 = vld [vmem:[#allocation5 + $0xf0] sm:$0xff] }
 0x157   :  { %v2925_v43 = vcombine.low %v992_v28, %v996_v29  ;;  %v3408_v20 = vld [vmem:[#allocation7 + $0x34] ss:$8 sps:$4 sm:$0xff]  }
 0x158   :  { %3260 = vmatmul.mubr.bf16.vlgmr.msra.gmra.mrb[8].mxu0 %v853_v30  ;;  %v993_v30 = vld [vmem:[#allocation5 + $0xd8] sm:$0xff] }
 0x159   :  { %1434 = vmatpush1.bf16.msra.mxu0 %v2899_v41  ;;  %v1015_v41 = vld [vmem:[#allocation5 + $0x188] sm:$0xff]  ;;  %1465 = vmatprep.mubr.bf16.mxu0 %v3682_v5 }
 0x15a   :  { %1435 = vmatprep.subr.bf16.mxu0 %v2908_v31  ;;  %v2948_v51 = vcombine.high %v1015_v41, %v1019_v49  ;;  %v2947_v52 = vcombine.low %v1015_v41, %v1019_v49  ;;  %v997_v31 = vld [vmem:[#allocation5 + $0xf8] sm:$0xff]  ;;  %v2933_v41 = vcombine.low %v1000_v37, %v1004_v39 }
 0x15b   :  { %v2927_v44 = vcombine.low %v993_v30, %v997_v31 }
 0x15d   :  { %1436 = vmatpush1.bf16.msra.mxu0 %v2907_v34  ;;  %v2926_v34 = vcombine.high %v992_v28, %v996_v29  ;;  %v3420_v28 = vld [vmem:[#allocation7 + $0x54] ss:$8 sps:$4 sm:$0xff]   ;;  %v3415_v29 = vld [vmem:[#allocation7 + $0x150] ss:$8 sps:$4 sm:$0xff]  }
 0x15e   :  { %1437 = vmatprep.subr.bf16.mxu0 %v2916_v36  ;;  %v2928_v36 = vcombine.high %v993_v30, %v997_v31  ;;  %v3418_v30 = vld [vmem:[#allocation7 + $0x50] ss:$8 sps:$4 sm:$0xff]   ;;  %v3423_v31 = vld [vmem:[#allocation7 + $0x164] ss:$8 sps:$4 sm:$0xff]  }
 0x161   :  { %1438 = vmatpush1.bf16.msra.mxu0 %v2915_v40  ;;  %v1001_v40 = vld [vmem:[#allocation5 + $0x118] sm:$0xff] }
 0x162   :  { %1439 = vmatprep.subr.bf16.mxu0 %v2924_v42  ;;  %v1005_v42 = vld [vmem:[#allocation5 + $0x138] sm:$0xff] }
 0x163   :  { %v2935_v49 = vcombine.low %v1001_v40, %v1005_v42 }
 0x165   :  { %1440 = vmatpush1.bf16.msra.mxu0 %v2923_v45  ;;  %v2934_v45 = vcombine.high %v1000_v37, %v1004_v39  ;;  %v3432_v37 = vld [vmem:[#allocation7 + $0x74] ss:$8 sps:$4 sm:$0xff]   ;;  %v3427_v39 = vld [vmem:[#allocation7 + $0x170] ss:$8 sps:$4 sm:$0xff]  }
 0x166   :  { %1441 = vmatprep.subr.bf16.mxu0 %v2932_v46  ;;  %v2936_v46 = vcombine.high %v1001_v40, %v1005_v42  ;;  %v3430_v40 = vld [vmem:[#allocation7 + $0x70] ss:$8 sps:$4 sm:$0xff]   ;;  %v3435_v42 = vld [vmem:[#allocation7 + $0x184] ss:$8 sps:$4 sm:$0xff]  }
 0x169   :  { %1442 = vmatpush1.bf16.msra.mxu0 %v2931_v35  ;;  %v1009_v35 = vld [vmem:[#allocation5 + $0x158] sm:$0xff] }
 0x16a   :  { %1443 = vmatprep.subr.bf16.mxu0 %v2940_v38  ;;  %v1013_v38 = vld [vmem:[#allocation5 + $0x178] sm:$0xff] }
 0x16b   :  { %v2943_v57 = vcombine.low %v1009_v35, %v1013_v38 }
 0x16d   :  { %1444 = vmatpush1.bf16.msra.mxu0 %v2939_v50  ;;  %v2942_v50 = vcombine.high %v1008_v47, %v1012_v48  ;;  %v3444_v47 = vld [vmem:[#allocation7 + $0x94] ss:$8 sps:$4 sm:$0xff]   ;;  %v3439_v48 = vld [vmem:[#allocation7 + $0x190] ss:$8 sps:$4 sm:$0xff]  }
 0x16e   :  { %1445 = vmatprep.subr.bf16.mxu0 %v2948_v51  ;;  %v2944_v51 = vcombine.high %v1009_v35, %v1013_v38  ;;  %v3442_v35 = vld [vmem:[#allocation7 + $0x90] ss:$8 sps:$4 sm:$0xff]   ;;  %v3447_v38 = vld [vmem:[#allocation7 + $0x1a4] ss:$8 sps:$4 sm:$0xff]  }
 0x171   :  { %1446 = vmatpush1.bf16.msra.mxu0 %v2947_v52  ;;  %v1016_v52 = vld [vmem:[#allocation5 + $0x190] sm:$0xff] }
 0x172   :  { %1447 = vmatprep.subr.bf16.mxu0 %v2956_v60  ;;  %v2950_v58 = vcombine.high %v1016_v52, %v1020_v53  ;;  %v1024_v60 = vld [vmem:[#allocation5 + $0x1d0] sm:$0xff]  ;;  %v2949_v0 = vcombine.low %v1016_v52, %v1020_v53 }
 0x173   :  { %v3456_v52 = vld [vmem:[#allocation7 + $0xb4] ss:$8 sps:$4 sm:$0xff]   ;;  %v3451_v53 = vld [vmem:[#allocation7 + $0x1b0] ss:$8 sps:$4 sm:$0xff]  }
 0x175   :  { %1448 = vmatpush1.bf16.msra.mxu0 %v2955_v59  ;;  %v2952_v59 = vcombine.high %v1017_v54, %v1021_v55  ;;  %v3454_v54 = vld [vmem:[#allocation7 + $0xb0] ss:$8 sps:$4 sm:$0xff]   ;;  %v3459_v55 = vld [vmem:[#allocation7 + $0x1c4] ss:$8 sps:$4 sm:$0xff]  }
 0x176   :  { %1515 = vmatprep.subr.bf16.mxu0 %v2904_v4  ;;  %v2957_v4 = vcombine.low %v1024_v60, %v1028_v61 }
 0x22b   :  { %v959_v8 = vpop.f32.mrb[8].mxu0 }
 0x22c   :  { %v960_v12 = vadd.f32 %v2888_v6, %v959_v8  ;;  %v3261_v13 = vpop.f32.mrb[9].mxu0  ;;  %v3387_v6 = vld [vmem:[#allocation7 + $0x104] ss:$8 sps:$4 sm:$0xff]   ;;  %v3385_v8 = vld [vmem:[#allocation7 + $0x100] ss:$8 sps:$4 sm:$0xff]  }
 0x22d   :  { %v962_v14 = vpop.f32.mrb[10].mxu0  ;;  %v3394_v13 = vld [vmem:[#allocation7 + $0x10] ss:$8 sps:$4 sm:$0xff]  }
 0x22e   :  { %v3793_v15 = vpack.c.bf16 %v960_v12, %v960_v12  ;;  %v3262_v16 = vpop.f32.mrb[11].mxu0  ;;  %v3391_v12 = vld [vmem:[#allocation7 + $0x110] ss:$8 sps:$4 sm:$0xff]   ;;  %v3399_v14 = vld [vmem:[#allocation7 + $0x124] ss:$8 sps:$4 sm:$0xff]  }
 0x22f   :  { %v3402_v16 = vld [vmem:[#allocation7 + $0x24] ss:$8 sps:$4 sm:$0xff]  }
 0x230   :  { %1425 = vmatmul.mubr.bf16.vlgmr.msra.gmra.mrb[8].mxu1 %v3793_v15  ;;  %1466 = vmatmul.mubr.bf16.vlgmr.msra.gmra.mrb[12].mxu0 %v3793_v15 }
 0x231   :  { %1475 = vmatpush1.bf16.msra.mxu1 %v2901_v2  ;;  %1516 = vmatpush1.bf16.msra.mxu0 %v2903_v3  ;;  %v2958_v2 = vcombine.high %v1024_v60, %v1028_v61  ;;  %v2960_v3 = vcombine.high %v1025_v62, %v1029_v63  ;;  %v3468_v60 = vld [vmem:[#allocation7 + $0xd4] ss:$8 sps:$4 sm:$0xff]   ;;  %v3463_v61 = vld [vmem:[#allocation7 + $0x1d0] ss:$8 sps:$4 sm:$0xff]  }
 0x232   :  { %1476 = vmatprep.subr.bf16.mxu1 %v2910_v17  ;;  %1517 = vmatprep.subr.bf16.mxu0 %v2912_v18  ;;  %v3397_v17 = vld [vmem:[#allocation7 + $0x120] ss:$8 sps:$4 sm:$0xff]  }
 0x233   :  { %1506 = vmatprep.mubr.bf16.mxu1 %v3682_v5  ;;  %1547 = vmatprep.mubr.bf16.mxu0 %v3682_v5  ;;  %v2959_v5 = vcombine.low %v1025_v62, %v1029_v63  ;;  %v3400_v18 = vld [vmem:[#allocation7 + $0x20] ss:$8 sps:$4 sm:$0xff]   ;;  %v3466_v62 = vld [vmem:[#allocation7 + $0xd0] ss:$8 sps:$4 sm:$0xff]   ;;  %v3471_v63 = vld [vmem:[#allocation7 + $0x1e4] ss:$8 sps:$4 sm:$0xff]  }
 0x235   :  { %1477 = vmatpush1.bf16.msra.mxu1 %v2909_v23  ;;  %1518 = vmatpush1.bf16.msra.mxu0 %v2911_v24  ;;  %v3414_v23 = vld [vmem:[#allocation7 + $0x44] ss:$8 sps:$4 sm:$0xff]   ;;  %v3409_v24 = vld [vmem:[#allocation7 + $0x140] ss:$8 sps:$4 sm:$0xff]  }
 0x236   :  { %1478 = vmatprep.subr.bf16.mxu1 %v2918_v26  ;;  %1519 = vmatprep.subr.bf16.mxu0 %v2920_v27  ;;  %v3412_v26 = vld [vmem:[#allocation7 + $0x40] ss:$8 sps:$4 sm:$0xff]   ;;  %v3417_v27 = vld [vmem:[#allocation7 + $0x154] ss:$8 sps:$4 sm:$0xff]  }
 0x239   :  { %1479 = vmatpush1.bf16.msra.mxu1 %v2917_v32  ;;  %1520 = vmatpush1.bf16.msra.mxu0 %v2919_v33  ;;  %v3426_v32 = vld [vmem:[#allocation7 + $0x64] ss:$8 sps:$4 sm:$0xff]   ;;  %v3421_v33 = vld [vmem:[#allocation7 + $0x160] ss:$8 sps:$4 sm:$0xff]  }
 0x23a   :  { %1480 = vmatprep.subr.bf16.mxu1 %v2926_v34  ;;  %1521 = vmatprep.subr.bf16.mxu0 %v2928_v36  ;;  %v3424_v34 = vld [vmem:[#allocation7 + $0x60] ss:$8 sps:$4 sm:$0xff]   ;;  %v3429_v36 = vld [vmem:[#allocation7 + $0x174] ss:$8 sps:$4 sm:$0xff]  }
 0x23d   :  { %1481 = vmatpush1.bf16.msra.mxu1 %v2925_v43  ;;  %1522 = vmatpush1.bf16.msra.mxu0 %v2927_v44  ;;  %v3438_v43 = vld [vmem:[#allocation7 + $0x84] ss:$8 sps:$4 sm:$0xff]   ;;  %v3433_v44 = vld [vmem:[#allocation7 + $0x180] ss:$8 sps:$4 sm:$0xff]  }
 0x23e   :  { %1482 = vmatprep.subr.bf16.mxu1 %v2934_v45  ;;  %1523 = vmatprep.subr.bf16.mxu0 %v2936_v46  ;;  %v3436_v45 = vld [vmem:[#allocation7 + $0x80] ss:$8 sps:$4 sm:$0xff]   ;;  %v3441_v46 = vld [vmem:[#allocation7 + $0x194] ss:$8 sps:$4 sm:$0xff]  }
 0x241   :  { %1483 = vmatpush1.bf16.msra.mxu1 %v2933_v41  ;;  %1524 = vmatpush1.bf16.msra.mxu0 %v2935_v49  ;;  %v3450_v41 = vld [vmem:[#allocation7 + $0xa4] ss:$8 sps:$4 sm:$0xff]   ;;  %v3445_v49 = vld [vmem:[#allocation7 + $0x1a0] ss:$8 sps:$4 sm:$0xff]  }
 0x242   :  { %1484 = vmatprep.subr.bf16.mxu1 %v2942_v50  ;;  %1525 = vmatprep.subr.bf16.mxu0 %v2944_v51  ;;  %v3448_v50 = vld [vmem:[#allocation7 + $0xa0] ss:$8 sps:$4 sm:$0xff]   ;;  %v3453_v51 = vld [vmem:[#allocation7 + $0x1b4] ss:$8 sps:$4 sm:$0xff]  }
 0x245   :  { %1485 = vmatpush1.bf16.msra.mxu1 %v2941_v56  ;;  %1526 = vmatpush1.bf16.msra.mxu0 %v2943_v57  ;;  %v3462_v56 = vld [vmem:[#allocation7 + $0xc4] ss:$8 sps:$4 sm:$0xff]   ;;  %v3457_v57 = vld [vmem:[#allocation7 + $0x1c0] ss:$8 sps:$4 sm:$0xff]  }
 0x246   :  { %1486 = vmatprep.subr.bf16.mxu1 %v2950_v58  ;;  %1527 = vmatprep.subr.bf16.mxu0 %v2952_v59  ;;  %v3460_v58 = vld [vmem:[#allocation7 + $0xc0] ss:$8 sps:$4 sm:$0xff]   ;;  %v3465_v59 = vld [vmem:[#allocation7 + $0x1d4] ss:$8 sps:$4 sm:$0xff]  }
 0x249   :  { %1487 = vmatpush1.bf16.msra.mxu1 %v2949_v0  ;;  %1528 = vmatpush1.bf16.msra.mxu0 %v2951_v1  ;;  %v3474_v0 = vld [vmem:[#allocation7 + $0xe4] ss:$8 sps:$4 sm:$0xff]   ;;  %v3469_v1 = vld [vmem:[#allocation7 + $0x1e0] ss:$8 sps:$4 sm:$0xff]  }
 0x24a   :  { %1488 = vmatprep.subr.bf16.mxu1 %v2958_v2  ;;  %1529 = vmatprep.subr.bf16.mxu0 %v2960_v3  ;;  %v3472_v2 = vld [vmem:[#allocation7 + $0xe0] ss:$8 sps:$4 sm:$0xff]   ;;  %v3477_v3 = vld [vmem:[#allocation7 + $0x1f4] ss:$8 sps:$4 sm:$0xff]  }
 0x24d   :  { %1489 = vmatpush1.bf16.msra.mxu1 %v2957_v4  ;;  %1530 = vmatpush1.bf16.msra.mxu0 %v2959_v5  ;;  %v3480_v4 = vld [vmem:[#allocation7 + $0xf4] ss:$8 sps:$4 sm:$0xff]   ;;  %v3475_v5 = vld [vmem:[#allocation7 + $0x1f0] ss:$8 sps:$4 sm:$0xff]  }
 0x24e   :  { %2393 = vmatprep.subr.bf16.mxu1 %v3387_v6  ;;  %2352 = vmatprep.subr.bf16.mxu0 %v3390_v7  ;;  %v3478_v6 = vld [vmem:[#allocation7 + $0xf0] ss:$8 sps:$4 sm:$0xff]   ;;  %v3483_v7 = vld [vmem:[#allocation7 + $0x204] ss:$8 sps:$4 sm:$0xff]  }
 0x250   :  { %1507 = vmatmul.mubr.bf16.vlgmr.msra.gmra.mrb[12].mxu1 %v3793_v15  ;;  %1548 = vmatmul.mubr.bf16.vlgmr.msra.gmra.mrb[16].mxu0 %v3793_v15  ;;  %v3406_v15 = vld [vmem:[#allocation7 + $0x30] ss:$8 sps:$4 sm:$0xff]  }
 0x251   :  { %2394 = vmatpush1.bf16.msra.mxu1 %v3385_v8  ;;  %2353 = vmatpush1.bf16.msra.mxu0 %v3388_v9  ;;  %v1032_v8 = vlaneseq }
 0x252   :  { %2395 = vmatprep.subr.bf16.mxu1 %v3393_v10  ;;  %2354 = vmatprep.subr.bf16.mxu0 %v3396_v11 }
 0x253   :  { %v3799_v9 = vshrl.u32 %v1032_v8, 7  ;;  %v3513_v8 = vld [vmem:[#allocation7 + $0x2a4] ss:$8 sps:$4 sm:$0xff]  }
 0x255   :  { %2396 = vmatpush1.bf16.msra.mxu1 %v3391_v12  ;;  %2355 = vmatpush1.bf16.msra.mxu0 %v3394_v13  ;;  %v1034_v10 = vsub.s32 0, %v3799_v9  ;;  %v1042_v11 = vsub.s32 2, %v3799_v9  ;;  %v3806_v12 = vld [vmem:[%s3860_s5 + $0x2] sm:$0xff]  ;;  %v1038_v13 = vsub.s32 1, %v3799_v9 }
 0x256   :  { %2397 = vmatprep.subr.bf16.mxu1 %v3399_v14  ;;  %2356 = vmatprep.subr.bf16.mxu0 %v3402_v16  ;;  %v1046_v14 = vsub.s32 3, %v3799_v9 }
 0x257   :  { %v1035_v16 = vrot.slane %v3806_v12, %v1034_v10 }
 0x259   :  { %2398 = vmatpush1.bf16.msra.mxu1 %v3397_v17  ;;  %2357 = vmatpush1.bf16.msra.mxu0 %v3400_v18  ;;  %v1043_v17 = vrot.slane %v3806_v12, %v1042_v11  ;;  %v1039_v18 = vrot.slane %v3806_v12, %v1038_v13  ;;  %v3511_v11 = vld [vmem:[#allocation7 + $0x2a0] ss:$8 sps:$4 sm:$0xff]  }
 0x25a   :  { %2399 = vmatprep.subr.bf16.mxu1 %v3405_v19  ;;  %2358 = vmatprep.subr.bf16.mxu0 %v3408_v20  ;;  %v1047_v19 = vrot.slane %v3806_v12, %v1046_v14  ;;  %v3516_v14 = vld [vmem:[#allocation7 + $0x2b4] ss:$8 sps:$4 sm:$0xff]  }
 0x25d   :  { %2400 = vmatpush1.bf16.msra.mxu1 %v3403_v21  ;;  %2359 = vmatpush1.bf16.msra.mxu0 %v3406_v15 }
 0x25e   :  { %2401 = vmatprep.subr.bf16.mxu1 %v3411_v22  ;;  %2360 = vmatprep.subr.bf16.mxu0 %v3414_v23 }
 0x261   :  { %2402 = vmatpush1.bf16.msra.mxu1 %v3409_v24  ;;  %2361 = vmatpush1.bf16.msra.mxu0 %v3412_v26 }
 0x262   :  { %2403 = vmatprep.subr.bf16.mxu1 %v3417_v27  ;;  %2362 = vmatprep.subr.bf16.mxu0 %v3420_v28 }
 0x265   :  { %2404 = vmatpush1.bf16.msra.mxu1 %v3415_v29  ;;  %2363 = vmatpush1.bf16.msra.mxu0 %v3418_v30 }
 0x266   :  { %2405 = vmatprep.subr.bf16.mxu1 %v3423_v31  ;;  %2364 = vmatprep.subr.bf16.mxu0 %v3426_v32 }
 0x269   :  { %2406 = vmatpush1.bf16.msra.mxu1 %v3421_v33  ;;  %2365 = vmatpush1.bf16.msra.mxu0 %v3424_v34 }
 0x26a   :  { %2407 = vmatprep.subr.bf16.mxu1 %v3429_v36  ;;  %2366 = vmatprep.subr.bf16.mxu0 %v3432_v37 }
 0x26d   :  { %2408 = vmatpush1.bf16.msra.mxu1 %v3427_v39  ;;  %2367 = vmatpush1.bf16.msra.mxu0 %v3430_v40  ;;  %v3481_v40 = vld [vmem:[#allocation7 + $0x200] ss:$8 sps:$4 sm:$0xff]  }
 0x26e   :  { %2409 = vmatprep.subr.bf16.mxu1 %v3435_v42  ;;  %2368 = vmatprep.subr.bf16.mxu0 %v3438_v43 }
 0x271   :  { %2410 = vmatpush1.bf16.msra.mxu1 %v3433_v44  ;;  %2369 = vmatpush1.bf16.msra.mxu0 %v3436_v45  ;;  %v3486_v44 = vld [vmem:[#allocation7 + $0x214] ss:$8 sps:$4 sm:$0xff]   ;;  %v3484_v45 = vld [vmem:[#allocation7 + $0x210] ss:$8 sps:$4 sm:$0xff]  }
 0x272   :  { %2411 = vmatprep.subr.bf16.mxu1 %v3441_v46  ;;  %2370 = vmatprep.subr.bf16.mxu0 %v3444_v47  ;;  %v3489_v46 = vld [vmem:[#allocation7 + $0x224] ss:$8 sps:$4 sm:$0xff]   ;;  %v3487_v47 = vld [vmem:[#allocation7 + $0x220] ss:$8 sps:$4 sm:$0xff]  }
 0x275   :  { %2412 = vmatpush1.bf16.msra.mxu1 %v3439_v48  ;;  %2371 = vmatpush1.bf16.msra.mxu0 %v3442_v35  ;;  %v3492_v48 = vld [vmem:[#allocation7 + $0x234] ss:$8 sps:$4 sm:$0xff]   ;;  %v3490_v35 = vld [vmem:[#allocation7 + $0x230] ss:$8 sps:$4 sm:$0xff]  }
 0x276   :  { %2413 = vmatprep.subr.bf16.mxu1 %v3447_v38  ;;  %2372 = vmatprep.subr.bf16.mxu0 %v3450_v41  ;;  %v3495_v38 = vld [vmem:[#allocation7 + $0x244] ss:$8 sps:$4 sm:$0xff]   ;;  %v3493_v41 = vld [vmem:[#allocation7 + $0x240] ss:$8 sps:$4 sm:$0xff]  }
 0x279   :  { %2414 = vmatpush1.bf16.msra.mxu1 %v3445_v49  ;;  %2373 = vmatpush1.bf16.msra.mxu0 %v3448_v50  ;;  %v3498_v49 = vld [vmem:[#allocation7 + $0x254] ss:$8 sps:$4 sm:$0xff]   ;;  %v3496_v50 = vld [vmem:[#allocation7 + $0x250] ss:$8 sps:$4 sm:$0xff]  }
 0x27a   :  { %2415 = vmatprep.subr.bf16.mxu1 %v3453_v51  ;;  %2374 = vmatprep.subr.bf16.mxu0 %v3456_v52  ;;  %v1054_v51 = vsub.s32 5, %v3799_v9  ;;  %v3501_v52 = vld [vmem:[#allocation7 + $0x264] ss:$8 sps:$4 sm:$0xff]  }
 0x27d   :  { %2416 = vmatpush1.bf16.msra.mxu1 %v3451_v53  ;;  %2375 = vmatpush1.bf16.msra.mxu0 %v3454_v54  ;;  %v1055_v53 = vrot.slane %v3806_v12, %v1054_v51  ;;  %v3499_v54 = vld [vmem:[#allocation7 + $0x260] ss:$8 sps:$4 sm:$0xff]  }
 0x27e   :  { %2417 = vmatprep.subr.bf16.mxu1 %v3459_v55  ;;  %2376 = vmatprep.subr.bf16.mxu0 %v3462_v56  ;;  %v3504_v55 = vld [vmem:[#allocation7 + $0x274] ss:$8 sps:$4 sm:$0xff]   ;;  %v3578_v51 = vld [vmem:[#allocation3 + $0x240] sm:$0xff]  }
 0x281   :  { %2418 = vmatpush1.bf16.msra.mxu1 %v3457_v57  ;;  %2377 = vmatpush1.bf16.msra.mxu0 %v3460_v58 }
 0x282   :  { %2419 = vmatprep.subr.bf16.mxu1 %v3465_v59  ;;  %2378 = vmatprep.subr.bf16.mxu0 %v3468_v60 }
 0x285   :  { %2420 = vmatpush1.bf16.msra.mxu1 %v3463_v61  ;;  %2379 = vmatpush1.bf16.msra.mxu0 %v3466_v62 }
 0x286   :  { %2421 = vmatprep.subr.bf16.mxu1 %v3471_v63  ;;  %2380 = vmatprep.subr.bf16.mxu0 %v3474_v0  ;;  %v3502_v63 = vld [vmem:[#allocation7 + $0x270] ss:$8 sps:$4 sm:$0xff]  }
 0x289   :  { %2422 = vmatpush1.bf16.msra.mxu1 %v3469_v1  ;;  %2381 = vmatpush1.bf16.msra.mxu0 %v3472_v2  ;;  %v3507_v2 = vld [vmem:[#allocation7 + $0x284] ss:$8 sps:$4 sm:$0xff]  }
 0x28a   :  { %2423 = vmatprep.subr.bf16.mxu1 %v3477_v3  ;;  %2382 = vmatprep.subr.bf16.mxu0 %v3480_v4 }
 0x28d   :  { %2424 = vmatpush1.bf16.msra.mxu1 %v3475_v5  ;;  %2383 = vmatpush1.bf16.msra.mxu0 %v3478_v6  ;;  %v3505_v5 = vld [vmem:[#allocation7 + $0x280] ss:$8 sps:$4 sm:$0xff]   ;;  %v3510_v6 = vld [vmem:[#allocation7 + $0x294] ss:$8 sps:$4 sm:$0xff]  }
 0x28e   :  { %2434 = vmatprep.subr.bf16.mxu1 %v3483_v7  ;;  %v3508_v7 = vld [vmem:[#allocation7 + $0x290] ss:$8 sps:$4 sm:$0xff]  }
 0x303   :  { %v1426_v20 = vpop.f32.mrb[8].mxu1  ;;  %v1467_v21 = vpop.f32.mrb[12].mxu0 }
 0x304   :  { %v1427_v15 = vadd.f32 %v1426_v20, %v1035_v16  ;;  %v1468_v22 = vadd.f32 %v1467_v21, %v1043_v17  ;;  %v1428_v23 = vpop.f32.mrb[9].mxu1  ;;  %v1469_v24 = vpop.f32.mrb[13].mxu0  ;;  %v3514_v16 = vld [vmem:[#allocation7 + $0x2b0] ss:$8 sps:$4 sm:$0xff]   ;;  %v3519_v17 = vld [vmem:[#allocation7 + $0x2c4] ss:$8 sps:$4 sm:$0xff]  }
 0x305   :  { %v1429_v26 = vadd.f32 %v1428_v23, %v1039_v18  ;;  %v1470_v27 = vadd.f32 %v1469_v24, %v1047_v19  ;;  %v1430_v28 = vpop.f32.mrb[10].mxu1  ;;  %v1471_v29 = vpop.f32.mrb[14].mxu0  ;;  %v3517_v18 = vld [vmem:[#allocation7 + $0x2c0] ss:$8 sps:$4 sm:$0xff]   ;;  %v1050_v19 = vsub.s32 4, %v3799_v9  ;;  %v1062_v21 = vsub.s32 7, %v3799_v9 }
 0x306   :  { %v1556_v30 = vmax.f32 %v1427_v15, 0.0  ;;  %v1558_v31 = vmax.f32 %v1468_v22, 0.0  ;;  %v1431_v32 = vpop.f32.mrb[11].mxu1  ;;  %v1472_v33 = vpop.f32.mrb[15].mxu0  ;;  %v3522_v20 = vld [vmem:[#allocation7 + $0x2d4] ss:$8 sps:$4 sm:$0xff]  }
 0x307   :  { %v1557_v34 = vmax.f32 %v1429_v26, 0.0  ;;  %v1559_v36 = vmax.f32 %v1470_v27, 0.0  ;;  %v3520_v15 = vld [vmem:[#allocation7 + $0x2d0] ss:$8 sps:$4 sm:$0xff]   ;;  %v1051_v22 = vrot.slane %v3806_v12, %v1050_v19  ;;  %v3525_v23 = vld [vmem:[#allocation7 + $0x2e4] ss:$8 sps:$4 sm:$0xff]   ;;  %v1063_v24 = vrot.slane %v3806_v12, %v1062_v21 }
 0x308   :  { %v1564_v42 = vpack.c.bf16 %v1556_v30, %v1556_v30  ;;  %v1566_v43 = vpack.c.bf16 %v1558_v31, %v1558_v31  ;;  %v3523_v26 = vld [vmem:[#allocation7 + $0x2e0] ss:$8 sps:$4 sm:$0xff]   ;;  %v3528_v28 = vld [vmem:[#allocation7 + $0x2f4] ss:$8 sps:$4 sm:$0xff]   ;;  %v3526_v30 = vld [vmem:[#allocation7 + $0x2f0] ss:$8 sps:$4 sm:$0xff]  }
 0x309   :  { %v1565_v37 = vpack.c.bf16 %v1557_v34, %v1557_v34  ;;  %v1567_v39 = vpack.c.bf16 %v1559_v36, %v1559_v36  ;;  %v3531_v32 = vld [vmem:[#allocation7 + $0x304] ss:$8 sps:$4 sm:$0xff]   ;;  %v3529_v34 = vld [vmem:[#allocation7 + $0x300] ss:$8 sps:$4 sm:$0xff]  }
 0x30a   :  { %v3573_v19 = vld [vmem:[#allocation7 + $0x3e4] ss:$8 sps:$4 sm:$0xff]  }
 0x30b   :  { %2384 = vmatprep.mubr.bf16.mxu0 %v1565_v37  ;;  %2425 = vmatprep.mubr.bf16.mxu1 %v1567_v39  ;;  %v3534_v37 = vld [vmem:[#allocation7 + $0x314] ss:$8 sps:$4 sm:$0xff]  }
 0x30c   :  { %2385 = vmatmul.mubr.bf16.vlgmr.msra.gmra.mrb[20].mxu0 %v1564_v42  ;;  %2426 = vmatmul.mubr.bf16.vlgmr.msra.gmra.mrb[16].mxu1 %v1566_v43  ;;  %v3537_v42 = vld [vmem:[#allocation7 + $0x324] ss:$8 sps:$4 sm:$0xff]   ;;  %v3535_v43 = vld [vmem:[#allocation7 + $0x320] ss:$8 sps:$4 sm:$0xff]  }
 0x30d   :  { %2435 = vmatpush1.bf16.msra.mxu1 %v3481_v40  ;;  %v3532_v40 = vld [vmem:[#allocation7 + $0x310] ss:$8 sps:$4 sm:$0xff]  }
 0x30e   :  { %2436 = vmatprep.subr.bf16.mxu1 %v3486_v44  ;;  %v3540_v44 = vld [vmem:[#allocation7 + $0x334] ss:$8 sps:$4 sm:$0xff]  }
 0x311   :  { %2437 = vmatpush1.bf16.msra.mxu1 %v3484_v45  ;;  %v3538_v45 = vld [vmem:[#allocation7 + $0x330] ss:$8 sps:$4 sm:$0xff]  }
 0x312   :  { %2438 = vmatprep.subr.bf16.mxu1 %v3489_v46  ;;  %v3543_v46 = vld [vmem:[#allocation7 + $0x344] ss:$8 sps:$4 sm:$0xff]  }
 0x315   :  { %2439 = vmatpush1.bf16.msra.mxu1 %v3487_v47  ;;  %v3541_v47 = vld [vmem:[#allocation7 + $0x340] ss:$8 sps:$4 sm:$0xff]  }
 0x316   :  { %2440 = vmatprep.subr.bf16.mxu1 %v3492_v48  ;;  %v3546_v48 = vld [vmem:[#allocation7 + $0x354] ss:$8 sps:$4 sm:$0xff]  }
 0x319   :  { %2441 = vmatpush1.bf16.msra.mxu1 %v3490_v35  ;;  %v3544_v35 = vld [vmem:[#allocation7 + $0x350] ss:$8 sps:$4 sm:$0xff]  }
 0x31a   :  { %2442 = vmatprep.subr.bf16.mxu1 %v3495_v38  ;;  %v3549_v38 = vld [vmem:[#allocation7 + $0x364] ss:$8 sps:$4 sm:$0xff]  }
 0x31d   :  { %2443 = vmatpush1.bf16.msra.mxu1 %v3493_v41  ;;  %v3547_v41 = vld [vmem:[#allocation7 + $0x360] ss:$8 sps:$4 sm:$0xff]  }
 0x31e   :  { %2444 = vmatprep.subr.bf16.mxu1 %v3498_v49  ;;  %v3552_v49 = vld [vmem:[#allocation7 + $0x374] ss:$8 sps:$4 sm:$0xff]  }
 0x321   :  { %2445 = vmatpush1.bf16.msra.mxu1 %v3496_v50  ;;  %v3577_v50 = vld [vmem:[#allocation3 + $0x280] sm:$0xff]  }
 0x322   :  { %2446 = vmatprep.subr.bf16.mxu1 %v3501_v52  ;;  %v3579_v52 = vld [vmem:[#allocation3 + $0x288] sm:$0xff]   ;;  %3212 = vmatprep.subr.bf16.mxu0 %v3577_v50  ;;  %v3599_v50 = vld [vmem:[#allocation3 + $0x2f0] sm:$0xff]  }
 0x323   :  { %v1508_v56 = vpop.f32.mrb[12].mxu1  ;;  %v3820_v57 = vpop.f32.mrb[16].mxu0  ;;  %3213 = vmatpush3.bf16.msra.mxu0 %v3578_v51  ;;  %v3600_v51 = vld [vmem:[#allocation3 + $0x2f8] sm:$0xff]  }
 0x324   :  { %v1510_v58 = vpop.f32.mrb[13].mxu1  ;;  %v1551_v59 = vpop.f32.mrb[17].mxu0  ;;  %v1509_v27 = vadd.f32 %v1508_v56, %v1051_v22  ;;  %3214 = vmatprep.subr.bf16.mxu0 %v3579_v52  ;;  %v3581_v56 = vld [vmem:[#allocation3 + $0x290] sm:$0xff]  }
 0x325   :  { %v1511_v60 = vadd.f32 %v1510_v58, %v1055_v53  ;;  %v1512_v61 = vpop.f32.mrb[14].mxu1  ;;  %v1553_v62 = vpop.f32.mrb[18].mxu0  ;;  %2447 = vmatpush1.bf16.msra.mxu1 %v3499_v54  ;;  %v1552_v29 = vadd.f32 %v1551_v59, %v1063_v24  ;;  %v3550_v53 = vld [vmem:[#allocation7 + $0x370] ss:$8 sps:$4 sm:$0xff]   ;;  %v3580_v54 = vld [vmem:[#allocation3 + $0x248] sm:$0xff]  }
 0x326   :  { %v1513_v0 = vpop.f32.mrb[15].mxu1  ;;  %v1554_v1 = vpop.f32.mrb[19].mxu0  ;;  %2448 = vmatprep.subr.bf16.mxu1 %v3504_v55  ;;  %v1560_v31 = vmax.f32 %v1509_v27, 0.0  ;;  %v3555_v55 = vld [vmem:[#allocation7 + $0x384] ss:$8 sps:$4 sm:$0xff]   ;;  %v3582_v59 = vld [vmem:[#allocation3 + $0x250] sm:$0xff]  }
 0x327   :  { %v1561_v3 = vmax.f32 %v1511_v60, 0.0  ;;  %v1563_v33 = vmax.f32 %v1552_v29, 0.0  ;;  %v3553_v58 = vld [vmem:[#allocation7 + $0x380] ss:$8 sps:$4 sm:$0xff]   ;;  %3215 = vmatpush3.bf16.msra.mxu0 %v3580_v54  ;;  %v3558_v60 = vld [vmem:[#allocation7 + $0x394] ss:$8 sps:$4 sm:$0xff]  }
 0x328   :  { %v1568_v36 = vpack.c.bf16 %v1560_v31, %v1560_v31  ;;  %3216 = vmatprep.subr.bf16.mxu0 %v3581_v56  ;;  %v3583_v61 = vld [vmem:[#allocation3 + $0x298] sm:$0xff]   ;;  %v3561_v0 = vld [vmem:[#allocation7 + $0x3a4] ss:$8 sps:$4 sm:$0xff]  }
 0x329   :  { %v1569_v4 = vpack.c.bf16 %v1561_v3, %v1561_v3  ;;  %2449 = vmatpush1.bf16.msra.mxu1 %v3502_v63  ;;  %v1571_v39 = vpack.c.bf16 %v1563_v33, %v1563_v33  ;;  %v3556_v62 = vld [vmem:[#allocation7 + $0x390] ss:$8 sps:$4 sm:$0xff]   ;;  %v3585_v1 = vld [vmem:[#allocation3 + $0x2a0] sm:$0xff]  }
 0x32a   :  { %2450 = vmatprep.subr.bf16.mxu1 %v3507_v2  ;;  %v3584_v63 = vld [vmem:[#allocation3 + $0x258] sm:$0xff]   ;;  %v3559_v2 = vld [vmem:[#allocation7 + $0x3a0] ss:$8 sps:$4 sm:$0xff]  }
 0x32b   :  { %2466 = vmatprep.mubr.bf16.mxu1 %v1569_v4  ;;  %3217 = vmatpush3.bf16.msra.mxu0 %v3582_v59  ;;  %v3586_v3 = vld [vmem:[#allocation3 + $0x260] sm:$0xff]   ;;  %v3564_v4 = vld [vmem:[#allocation7 + $0x3b4] ss:$8 sps:$4 sm:$0xff]   ;;  %v3574_v22 = vld [vmem:[#allocation7 + $0x3f0] ss:$8 sps:$4 sm:$0xff]  }
 0x32c   :  { %3218 = vmatprep.subr.bf16.mxu0 %v3583_v61  ;;  %v3591_v31 = vld [vmem:[#allocation3 + $0x2b8] sm:$0xff]  }
 0x32d   :  { %2451 = vmatpush1.bf16.msra.mxu1 %v3505_v5  ;;  %v3587_v5 = vld [vmem:[#allocation3 + $0x2a8] sm:$0xff]  }
 0x32e   :  { %2452 = vmatprep.subr.bf16.mxu1 %v3510_v6  ;;  %v3562_v6 = vld [vmem:[#allocation7 + $0x3b0] ss:$8 sps:$4 sm:$0xff]  }
 0x32f   :  { %3219 = vmatpush3.bf16.msra.mxu0 %v3584_v63 }
 0x330   :  { %3220 = vmatprep.subr.bf16.mxu0 %v3585_v1 }
 0x331   :  { %2453 = vmatpush1.bf16.msra.mxu1 %v3508_v7  ;;  %v3588_v7 = vld [vmem:[#allocation3 + $0x268] sm:$0xff]  }
 0x332   :  { %2454 = vmatprep.subr.bf16.mxu1 %v3513_v8  ;;  %v3567_v8 = vld [vmem:[#allocation7 + $0x3c4] ss:$8 sps:$4 sm:$0xff]  }
 0x333   :  { %3221 = vmatpush3.bf16.msra.mxu0 %v3586_v3 }
 0x334   :  { %3222 = vmatprep.subr.bf16.mxu0 %v3587_v5 }
 0x335   :  { %2455 = vmatpush1.bf16.msra.mxu1 %v3511_v11  ;;  %v3565_v11 = vld [vmem:[#allocation7 + $0x3c0] ss:$8 sps:$4 sm:$0xff]  }
 0x336   :  { %2456 = vmatprep.subr.bf16.mxu1 %v3516_v14  ;;  %v1058_v14 = vsub.s32 6, %v3799_v9  ;;  %v3595_v9 = vld [vmem:[#allocation3 + $0x2d0] sm:$0xff]  }
 0x337   :  { %3223 = vmatpush3.bf16.msra.mxu0 %v3588_v7 }
 0x339   :  { %2457 = vmatpush1.bf16.msra.mxu1 %v3514_v16  ;;  %v3570_v16 = vld [vmem:[#allocation7 + $0x3d4] ss:$8 sps:$4 sm:$0xff]  }
 0x33a   :  { %2458 = vmatprep.subr.bf16.mxu1 %v3519_v17  ;;  %v3568_v17 = vld [vmem:[#allocation7 + $0x3d0] ss:$8 sps:$4 sm:$0xff]  }
 0x33d   :  { %2459 = vmatpush1.bf16.msra.mxu1 %v3517_v18  ;;  %v1059_v18 = vrot.slane %v3806_v12, %v1058_v14 }
 0x33e   :  { %2460 = vmatprep.subr.bf16.mxu1 %v3522_v20  ;;  %v3571_v20 = vld [vmem:[#allocation7 + $0x3e0] ss:$8 sps:$4 sm:$0xff]  }
 0x33f   :  { %v1550_v21 = vadd.f32 %v3820_v57, %v1059_v18  ;;  %v1700_v57 = vld [vmem:[%s3860_s5 + $0xa] sm:$0x3] }
 0x340   :  { %v1705_v33 = vrot.slane %v1700_v57, %v1034_v10  ;;  %v3594_v10 = vld [vmem:[#allocation3 + $0x2c8] sm:$0xff]  }
 0x341   :  { %2461 = vmatpush1.bf16.msra.mxu1 %v3520_v15  ;;  %v3576_v15 = vld [vmem:[#allocation7 + $0x3f4] ss:$8 sps:$4 sm:$0xff]  }
 0x342   :  { %2462 = vmatprep.subr.bf16.mxu1 %v3525_v23  ;;  %v1562_v23 = vmax.f32 %v1550_v21, 0.0 }
 0x344   :  { %v1570_v24 = vpack.c.bf16 %v1562_v23, %v1562_v23 }
 0x345   :  { %2463 = vmatpush1.bf16.msra.mxu1 %v3523_v26  ;;  %v3589_v26 = vld [vmem:[#allocation3 + $0x2b0] sm:$0xff]  }
 0x346   :  { %2464 = vmatprep.subr.bf16.mxu1 %v3528_v28  ;;  %v3590_v28 = vld [vmem:[#allocation3 + $0x270] sm:$0xff]   ;;  %3224 = vmatprep.subr.bf16.mxu0 %v3589_v26 }
 0x347   :  { %3225 = vmatpush3.bf16.msra.mxu0 %v3590_v28 }
 0x348   :  { %3226 = vmatprep.subr.bf16.mxu0 %v3591_v31 }
 0x349   :  { %2465 = vmatpush1.bf16.msra.mxu1 %v3526_v30 }
 0x34a   :  { %2475 = vmatprep.subr.bf16.mxu1 %v3531_v32  ;;  %v3592_v32 = vld [vmem:[#allocation3 + $0x278] sm:$0xff]  }
 0x34b   :  { %3227 = vmatpush3.bf16.msra.mxu0 %v3592_v32 }
 0x34c   :  { %2467 = vmatmul.mubr.bf16.vlgmr.msra.gmra.mrb[16].mxu1 %v1568_v36  ;;  %3263 = vmatprep.subr.bf16.mxu0 %v3680_v25 }
 0x34d   :  { %2476 = vmatpush1.bf16.msra.mxu1 %v3529_v34  ;;  %2507 = vmatprep.mubr.bf16.mxu1 %v1571_v39  ;;  %v1709_v34 = vrot.slane %v1700_v57, %v1038_v13  ;;  %v3596_v13 = vld [vmem:[#allocation3 + $0x2d8] sm:$0xff]  }
 0x34e   :  { %2477 = vmatprep.subr.bf16.mxu1 %v3534_v37 }
 0x351   :  { %2478 = vmatpush1.bf16.msra.mxu1 %v3532_v40 }
 0x352   :  { %2479 = vmatprep.subr.bf16.mxu1 %v3537_v42 }
 0x355   :  { %2480 = vmatpush1.bf16.msra.mxu1 %v3535_v43 }
 0x356   :  { %2481 = vmatprep.subr.bf16.mxu1 %v3540_v44 }
 0x359   :  { %2482 = vmatpush1.bf16.msra.mxu1 %v3538_v45 }
 0x35a   :  { %2483 = vmatprep.subr.bf16.mxu1 %v3543_v46 }
 0x35d   :  { %2484 = vmatpush1.bf16.msra.mxu1 %v3541_v47 }
 0x35e   :  { %2485 = vmatprep.subr.bf16.mxu1 %v3546_v48 }
 0x361   :  { %2486 = vmatpush1.bf16.msra.mxu1 %v3544_v35  ;;  %v3593_v35 = vld [vmem:[#allocation3 + $0x2c0] sm:$0xff]  }
 0x362   :  { %2487 = vmatprep.subr.bf16.mxu1 %v3549_v38 }
 0x365   :  { %2488 = vmatpush1.bf16.msra.mxu1 %v3547_v41  ;;  %v3597_v41 = vld [vmem:[#allocation3 + $0x2e0] sm:$0xff]  }
 0x366   :  { %2489 = vmatprep.subr.bf16.mxu1 %v3552_v49  ;;  %v3598_v49 = vld [vmem:[#allocation3 + $0x2e8] sm:$0xff]  }
 0x369   :  { %2490 = vmatpush1.bf16.msra.mxu1 %v3550_v53  ;;  %v3089_v53 = vld [vmem:[%s3860_s5 + $0xc] ss:$0 sm:$0xff] }
 0x36a   :  { %2491 = vmatprep.subr.bf16.mxu1 %v3555_v55 }
 0x36d   :  { %2492 = vmatpush1.bf16.msra.mxu1 %v3553_v58 }
 0x36e   :  { %2493 = vmatprep.subr.bf16.mxu1 %v3558_v60 }
 0x371   :  { %2494 = vmatpush1.bf16.msra.mxu1 %v3556_v62  ;;  %v3106_v62 = vld [vmem:[%s3860_s5 + $0xd] ss:$0 sm:$0xff] }
 0x372   :  { %2495 = vmatprep.subr.bf16.mxu1 %v3561_v0 }
 0x375   :  { %2496 = vmatpush1.bf16.msra.mxu1 %v3559_v2 }
 0x376   :  { %2497 = vmatprep.subr.bf16.mxu1 %v3564_v4 }
 0x379   :  { %2498 = vmatpush1.bf16.msra.mxu1 %v3562_v6 }
 0x37a   :  { %2499 = vmatprep.subr.bf16.mxu1 %v3567_v8 }
 0x37d   :  { %2500 = vmatpush1.bf16.msra.mxu1 %v3565_v11 }
 0x37e   :  { %2501 = vmatprep.subr.bf16.mxu1 %v3570_v16 }
 0x381   :  { %2502 = vmatpush1.bf16.msra.mxu1 %v3568_v17 }
 0x382   :  { %2503 = vmatprep.subr.bf16.mxu1 %v3573_v19 }
 0x385   :  { %2504 = vmatpush1.bf16.msra.mxu1 %v3571_v20 }
 0x386   :  { %2505 = vmatprep.subr.bf16.mxu1 %v3576_v15 }
 0x389   :  { %2506 = vmatpush1.bf16.msra.mxu1 %v3574_v22 }
 0x38c   :  { %2508 = vmatmul.mubr.bf16.vlgmr.msra.gmra.mrb[16].mxu1 %v1570_v24 }
 0x3df   :  { %v2386_v27 = vpop.f32.mrb[20].mxu0 }
 0x3e0   :  { %v2388_v29 = vpop.f32.mrb[21].mxu0  ;;  %v2387_v36 = vadd.f32 %v2386_v27, %v1705_v33 }
 0x3e1   :  { %v2390_v12 = vpop.f32.mrb[22].mxu0  ;;  %v2389_v37 = vadd.f32 %v2388_v29, %v1709_v34 }
 0x3e2   :  { %v2391_v30 = vpop.f32.mrb[23].mxu0 }
 0x45f   :  { %v2509_v39 = vpop.f32.mrb[16].mxu1 }
 0x460   :  { %v3284_v40 = vadd.f32 %v2509_v39, %v2387_v36  ;;  %v2511_v42 = vpop.f32.mrb[17].mxu1 }
 0x461   :  { %v3286_v43 = vadd.f32 %v2511_v42, %v2389_v37  ;;  %v2513_v44 = vpop.f32.mrb[18].mxu1 }
 0x462   :  { %v2516_v45 = vmax.f32 %v3284_v40, 0.0  ;;  %v2514_v46 = vpop.f32.mrb[19].mxu1 }
 0x463   :  { %v2517_v47 = vmax.f32 %v3286_v43, 0.0 }
 0x464   :  { %v2518_v38 = vpack.c.bf16 %v2516_v45, %v2516_v45 }
 0x465   :  { %v2519_v48 = vpack.c.bf16 %v2517_v47, %v2517_v47 }
 0x467   :  { %2687 = vmatprep.mubr.bf16.mxu0 %v2519_v48 }
 0x468   :  { %2688 = vmatmul.mubr.bf16.vlgmr.msra.gmra.mrb[24].mxu0 %v2518_v38 }
 0x469   :  { %3264 = vmatpush3.bf16.msra.mxu0 %v3593_v35  ;;  %3279 = vmatprep.mubr.msk.bf16.mxu0 %vm3681_vm0, %v3680_v25 }
 0x46a   :  { %3265 = vmatprep.subr.bf16.mxu0 %v3680_v25 }
 0x46d   :  { %3266 = vmatpush3.bf16.msra.mxu0 %v3594_v10 }
 0x46e   :  { %3267 = vmatprep.subr.bf16.mxu0 %v3680_v25 }
 0x471   :  { %3268 = vmatpush3.bf16.msra.mxu0 %v3595_v9 }
 0x472   :  { %3269 = vmatprep.subr.bf16.mxu0 %v3680_v25 }
 0x475   :  { %3270 = vmatpush3.bf16.msra.mxu0 %v3596_v13 }
 0x476   :  { %3271 = vmatprep.subr.bf16.mxu0 %v3680_v25 }
 0x479   :  { %3272 = vmatpush3.bf16.msra.mxu0 %v3597_v41 }
 0x47a   :  { %3273 = vmatprep.subr.bf16.mxu0 %v3680_v25 }
 0x47d   :  { %3274 = vmatpush3.bf16.msra.mxu0 %v3598_v49 }
 0x47e   :  { %3275 = vmatprep.subr.bf16.mxu0 %v3680_v25 }
 0x481   :  { %3276 = vmatpush3.bf16.msra.mxu0 %v3599_v50 }
 0x482   :  { %3277 = vmatprep.subr.bf16.mxu0 %v3680_v25 }
 0x485   :  { %3278 = vmatpush3.bf16.msra.mxu0 %v3600_v51 }
 0x53b   :  { %v3228_v52 = vpop.f32.mrb[24].mxu0 }
 0x53c   :  { %v3229_v54 = vpop.f32.mrb[25].mxu0 }
 0x53d   :  { %v3230_v55 = vadd.f32 %v3229_v54, %v3228_v52  ;;  %v3231_v56 = vpop.f32.mrb[26].mxu0 }
 0x53e   :  { %v3232_v58 = vpop.f32.mrb[27].mxu0 }
 0x53f   :  { %v2690_v59 = vadd.f32 %v3230_v55, %v3089_v53 }
 0x541   :  { %v2695_v60 = vmax.f32 %v2690_v59, 0.0 }
 0x543   :  { %v2696_v61 = vpack.c.bf16 %v2695_v60, %v2695_v60 }
 0x545   :  { %3280 = vmatmul.mubr.bf16.vlgmr.msra.gmra.mrb[28].mxu0 %v2696_v61 }
 0x618   :  { %v2802_v25 = vpop.f32.mrb[28].mxu0 }
 0x619   :  { %v2803_v63 = vadd.f32 %v3106_v62, %v2802_v25  ;;  %v3281_v0 = vpop.f32.mrb[29].mxu0 }
 0x61a   :  { %v2805_v1 = vpop.f32.mrb[30].mxu0 }
 0x61b   :  { %2808 = vst [vmem:[%s3861_s6] sm:$0xf] %v2803_v63  ;;  %v3282_v2 = vpop.f32.mrb[31].mxu0 }
 0x61c   :  { %2813 = vsyncpa [#allocation4], 1 }
 0x61d   :  { %2814 = vsyncpa [#allocation6], 1 }

</bundles_post_ra>
